<compile_context>
chip_gen: v7x
topology: tpu7x:2x2x1
jax: 0.10.0
libtpu: 0.0.40
codegen_flags: <defaults>
</compile_context>

<pallas_src>
from functools import partial

import jax
import jax.numpy as jnp
from jax.experimental import pallas as pl
from jax.experimental.pallas import tpu as pltpu


# ----------------------------- Pallas kernel ------------------------------ #
def _rel_pos_bias_kernel(q_ref, rh_ref, relw_ref, attn_ref, out_ref):
    th, wq, _ = q_ref.shape          # (Th, Wq, C)
    kh = rh_ref.shape[1]             # (Th, Kh, C)
    kw = relw_ref.shape[2]           # (Th, Wq, Kw)

    q = q_ref[...]                                   # (Th, Wq, C)
    rh = rh_ref[...].astype(q.dtype)                 # (Th, Kh, C)
    rel_w = relw_ref[...]                            # (Th, Wq, Kw), f32

    # rel_h[t, w, k] = sum_c q[t, w, c] * Rh[h0 + t, k, c]
    # leading-batch batched matmul -> MXU, f32 accumulation
    rel_h = jax.lax.dot_general(
        q, rh,
        dimension_numbers=(((2,), (2,)), ((0,), (0,))),
        preferred_element_type=jnp.float32)          # (Th, Wq, Kh)

    # Lane-dense bias: bias[t, w, k*Kw + j] = rel_h[t, w, k] + rel_w[t, w, j]
    bias = (rel_h[:, :, :, None] + rel_w[:, :, None, :]).reshape(th, wq, kh * kw)

    # Add in the attention dtype (avoids upcasting the big slab for bf16).
    out_ref[...] = attn_ref[...] + bias.astype(out_ref.dtype)


# ------------------------------ JAX glue ---------------------------------- #
def _linear_resize(emb, new_len):
    """(L, C) -> (new_len, C) linear interpolation.
    Matches torch.nn.functional.interpolate(mode='linear', align_corners=False)."""
    L, _ = emb.shape
    if new_len == L:
        return emb
    scale = L / new_len
    x = (jnp.arange(new_len, dtype=jnp.float32) + 0.5) * scale - 0.5
    x = jnp.clip(x, 0.0, L - 1)
    lo = jnp.floor(x).astype(jnp.int32)
    hi = jnp.minimum(lo + 1, L - 1)
    frac = (x - lo.astype(jnp.float32))[:, None]
    e = emb.astype(jnp.float32)
    return (e[lo] * (1.0 - frac) + e[hi] * frac).astype(emb.dtype)


def _get_rel_pos(q_size, k_size, rel_pos):
    """Gather (q_size, k_size, C) relative embeddings (torch get_rel_pos)."""
    max_rel_dist = 2 * max(q_size, k_size) - 1
    if rel_pos.shape[0] != max_rel_dist:
        rel_pos = _linear_resize(rel_pos, max_rel_dist)
    q_coords = jnp.arange(q_size, dtype=jnp.float32)[:, None] * max(k_size / q_size, 1.0)
    k_coords = jnp.arange(k_size, dtype=jnp.float32)[None, :] * max(q_size / k_size, 1.0)
    rel = q_coords - k_coords + (k_size - 1) * max(q_size / k_size, 1.0)
    return rel_pos[rel.astype(jnp.int32)]            # (q_size, k_size, C)


def _pick_row_tile(grid_h, row_bytes, batch, vmem_cap):
    """How many query rows (h) to fold per grid step, sized from VMEM capacity."""
    budget = max(1 << 20, vmem_cap // 24)            # target bytes per attn buffer
    th = max(1, min(grid_h, budget // max(row_bytes, 1)))
    while grid_h % th:
        th -= 1
    # keep >= 2 grid steps so a megacore chip (v7x: 2 TCs) can split the work
    while th > 1 and batch * (grid_h // th) < 2:
        th -= 1
        while grid_h % th:
            th -= 1
    return th


@partial(jax.jit, static_argnames=("patch_grid_hw", "base_grid_hw"))
def relative_position_encoder(attention, query_tokens, rel_pos_h, rel_pos_w,
                              patch_grid_hw, base_grid_hw):
    grid_h, grid_w = patch_grid_hw
    base_h, base_w = base_grid_hw
    B, Nq, C = query_tokens.shape
    N = grid_h * grid_w
    assert Nq == N and attention.shape == (B, N, N)

    rel_h_emb, rel_w_emb = rel_pos_h, rel_pos_w
    if grid_h != base_h or grid_w != base_w:
        rel_h_emb = _linear_resize(rel_pos_h, 2 * grid_h - 1)
        rel_w_emb = _linear_resize(rel_pos_w, 2 * grid_w - 1)

    Rh = _get_rel_pos(grid_h, grid_h, rel_h_emb)     # (grid_h, Kh, C)
    Rw = _get_rel_pos(grid_w, grid_w, rel_w_emb)     # (grid_w, Kw, C)

    q4 = query_tokens.reshape(B, grid_h, grid_w, C)          # free view
    attn4 = attention.reshape(B, grid_h, grid_w, N)          # free view, N stays minor

    # Tiny w-batched contraction done by XLA (MXU), streamed into the kernel.
    rel_w = jnp.einsum('bhwc,wkc->bhwk',
                       q4.astype(jnp.float32), Rw.astype(jnp.float32),
                       precision=jax.lax.Precision.HIGHEST)  # (B, grid_h, grid_w, Kw)

    # Generation-aware tiling / VMEM sizing (64 MiB on v7x, 128 MiB on v5e/v6e).
    try:
        vmem_cap = int(pltpu.get_tpu_info().vmem_capacity_bytes)
    except Exception:
        vmem_cap = 64 * 1024 * 1024                  # conservative (v7x-sized) fallback
    itemsize = jnp.dtype(attention.dtype).itemsize
    Th = _pick_row_tile(grid_h, grid_w * N * itemsize, B, vmem_cap)
    num_hb = grid_h // Th
    vmem_limit = int(max(32 * 1024 * 1024,
                         min(vmem_cap * 3 // 4, 100 * 1024 * 1024)))

    out4 = pl.pallas_call(
        _rel_pos_bias_kernel,
        out_shape=jax.ShapeDtypeStruct((B, grid_h, grid_w, N), attention.dtype),
        grid_spec=pltpu.PrefetchScalarGridSpec(
            num_scalar_prefetch=0,
            grid=(num_hb, B),                        # B innermost -> Rh stays resident
            in_specs=[
                pl.BlockSpec((None, Th, grid_w, C),
                             lambda h, b: (b, h, 0, 0)),      # q rows
                pl.BlockSpec((Th, grid_h, C),
                             lambda h, b: (h, 0, 0)),         # Rh rows
                pl.BlockSpec((None, Th, grid_w, grid_w),
                             lambda h, b: (b, h, 0, 0)),      # rel_w rows
                pl.BlockSpec((None, Th, grid_w, N),
                             lambda h, b: (b, h, 0, 0)),      # attn slab (lane-dense)
            ],
            out_specs=pl.BlockSpec((None, Th, grid_w, N),
                                   lambda h, b: (b, h, 0, 0)),
        ),
        compiler_params=pltpu.CompilerParams(
            dimension_semantics=("parallel", "parallel"),
            vmem_limit_bytes=vmem_limit),
    )(q4, Rh, rel_w, attn4)

    return out4.reshape(B, N, N)


# ------------------------------ reference ---------------------------------- #
def _reference(attention, query_tokens, rel_pos_h, rel_pos_w, patch_grid_hw, base_grid_hw):
    grid_h, grid_w = patch_grid_hw
    base_h, base_w = base_grid_hw
    rel_h_emb, rel_w_emb = rel_pos_h, rel_pos_w
    if grid_h != base_h or grid_w != base_w:
        rel_h_emb = _linear_resize(rel_pos_h, 2 * grid_h - 1)
        rel_w_emb = _linear_resize(rel_pos_w, 2 * grid_w - 1)
    Rh = _get_rel_pos(grid_h, grid_h, rel_h_emb)
    Rw = _get_rel_pos(grid_w, grid_w, rel_w_emb)
    B, _, C = query_tokens.shape
    r_q = query_tokens.reshape(B, grid_h, grid_w, C)
    hi = jax.lax.Precision.HIGHEST
    rel_h = jnp.einsum('bhwc,hkc->bhwk', r_q, Rh, precision=hi)
    rel_w = jnp.einsum('bhwc,wkc->bhwk', r_q, Rw, precision=hi)
    attn = attention.reshape(B, grid_h, grid_w, grid_h, grid_w)
    attn = attn + rel_h[..., None] + rel_w[:, :, :, None, :]
    return attn.reshape(B, grid_h * grid_w, grid_h * grid_w)


if __name__ == "__main__":
    key = jax.random.PRNGKey(0)
    B, C = 2, 32                      # batch, features_per_head
    base_grid_hw = (8, 8)             # base_patch_grid_hw

    k1, k2, k3, k4, k5, k6 = jax.random.split(key, 6)
    # Parameter shapes mirror the PyTorch module literally:
    #   rel_pos_h: (2*base_w - 1, C), rel_pos_w: (2*base_h - 1, C)
    # (torch init is zeros; deterministic random values so the kernel is exercised)
    rel_pos_h = 0.02 * jax.random.normal(k1, (2 * base_grid_hw[1] - 1, C), jnp.float32)
    rel_pos_w = 0.02 * jax.random.normal(k2, (2 * base_grid_hw[0] - 1, C), jnp.float32)

    # -- case 1: patch grid == base grid (no resize path) --------------------
    gh, gw = base_grid_hw
    N = gh * gw
    attention = jax.random.normal(k3, (B, N, N), jnp.float32)
    query_tokens = jax.random.normal(k4, (B, N, C), jnp.float32)

    out = relative_position_encoder(attention, query_tokens, rel_pos_h, rel_pos_w,
                                    patch_grid_hw=(gh, gw), base_grid_hw=base_grid_hw)
    out = jax.block_until_ready(out)
    ref = _reference(attention, query_tokens, rel_pos_h, rel_pos_w, (gh, gw), base_grid_hw)
    assert out.shape == (B, N, N) and out.dtype == attention.dtype
    assert jnp.allclose(out, ref, atol=1e-3, rtol=1e-3), "mismatch vs reference (base grid)"

    # -- case 2: patch grid != base grid (exercises the linear-resize path) --
    gh2, gw2 = 4, 4
    N2 = gh2 * gw2
    attention2 = jax.random.normal(k5, (B, N2, N2), jnp.float32)
    query_tokens2 = jax.random.normal(k6, (B, N2, C), jnp.float32)

    out2 = relative_position_encoder(attention2, query_tokens2, rel_pos_h, rel_pos_w,
                                     patch_grid_hw=(gh2, gw2), base_grid_hw=base_grid_hw)
    out2 = jax.block_until_ready(out2)
    ref2 = _reference(attention2, query_tokens2, rel_pos_h, rel_pos_w, (gh2, gw2), base_grid_hw)
    assert jnp.allclose(out2, ref2, atol=1e-3, rtol=1e-3), "mismatch vs reference (resized grid)"

    print("KERNEL_OK")
</pallas_src>

<mosaic_0001>
module attributes {stable_mosaic.version = 11 : i64} {
  func.func @_rel_pos_bias_kernel(%arg0: i32, %arg1: i32, %arg2: memref<1x8x8x32xf32, #tpu.memory_space<vmem>>, %arg3: memref<8x8x32xf32, #tpu.memory_space<vmem>>, %arg4: memref<1x8x8x8xf32, #tpu.memory_space<vmem>>, %arg5: memref<1x8x8x64xf32, #tpu.memory_space<vmem>>, %arg6: memref<1x8x8x64xf32, #tpu.memory_space<vmem>>) attributes {dimension_semantics = [#tpu.dimension_semantics<parallel>, #tpu.dimension_semantics<parallel>], iteration_bounds = array<i64: 1, 2>, scalar_prefetch = 0 : i64, scratch_operands = 0 : i64, tpu.core_type = #tpu.core_type<tc>, window_params = [{transform_indices = @transform_0, window_bounds = array<i64: 1, 8, 8, 32>}, {transform_indices = @transform_1, window_bounds = array<i64: 8, 8, 32>}, {transform_indices = @transform_2, window_bounds = array<i64: 1, 8, 8, 8>}, {transform_indices = @transform_3, window_bounds = array<i64: 1, 8, 8, 64>}, {transform_indices = @transform_4, window_bounds = array<i64: 1, 8, 8, 64>}]} {
    %c0 = arith.constant 0 : index
    %c0_0 = arith.constant 0 : index
    %c0_1 = arith.constant 0 : index
    %c0_2 = arith.constant 0 : index
    %0 = vector.load %arg2[%c0, %c0_0, %c0_1, %c0_2] : memref<1x8x8x32xf32, #tpu.memory_space<vmem>>, vector<1x8x8x32xf32>
    %1 = vector.shape_cast %0 : vector<1x8x8x32xf32> to vector<8x8x32xf32>
    %c0_3 = arith.constant 0 : index
    %c0_4 = arith.constant 0 : index
    %c0_5 = arith.constant 0 : index
    %2 = vector.load %arg3[%c0_3, %c0_4, %c0_5] : memref<8x8x32xf32, #tpu.memory_space<vmem>>, vector<8x8x32xf32>
    %c0_6 = arith.constant 0 : index
    %c0_7 = arith.constant 0 : index
    %c0_8 = arith.constant 0 : index
    %c0_9 = arith.constant 0 : index
    %3 = vector.load %arg4[%c0_6, %c0_7, %c0_8, %c0_9] : memref<1x8x8x8xf32, #tpu.memory_space<vmem>>, vector<1x8x8x8xf32>
    %4 = vector.shape_cast %3 : vector<1x8x8x8xf32> to vector<8x8x8xf32>
    %cst = arith.constant dense<0.000000e+00> : vector<8x8x8xf32>
    %5 = tpu.matmul %1, %2, %cst {dimension_numbers = #tpu.dot_dimension_numbers<[2], [2], [1], [1], [0, 0, 0, 1, 1, 1], [0], [0]>} : vector<8x8x32xf32>, vector<8x8x32xf32>, vector<8x8x8xf32> -> vector<8x8x8xf32>
    %6 = vector.shape_cast %5 : vector<8x8x8xf32> to vector<8x8x8x1xf32>
    %7 = vector.shape_cast %4 : vector<8x8x8xf32> to vector<8x8x1x8xf32>
    %8 = vector.broadcast %6 : vector<8x8x8x1xf32> to vector<8x8x8x8xf32>
    %9 = vector.broadcast %7 : vector<8x8x1x8xf32> to vector<8x8x8x8xf32>
    %10 = arith.addf %8, %9 : vector<8x8x8x8xf32>
    %11 = vector.shape_cast %10 : vector<8x8x8x8xf32> to vector<8x8x64xf32>
    %c0_10 = arith.constant 0 : index
    %c0_11 = arith.constant 0 : index
    %c0_12 = arith.constant 0 : index
    %c0_13 = arith.constant 0 : index
    %12 = vector.load %arg5[%c0_10, %c0_11, %c0_12, %c0_13] : memref<1x8x8x64xf32, #tpu.memory_space<vmem>>, vector<1x8x8x64xf32>
    %13 = vector.shape_cast %12 : vector<1x8x8x64xf32> to vector<8x8x64xf32>
    %14 = arith.addf %13, %11 : vector<8x8x64xf32>
    %c0_14 = arith.constant 0 : index
    %c0_15 = arith.constant 0 : index
    %c0_16 = arith.constant 0 : index
    %c0_17 = arith.constant 0 : index
    %15 = vector.load %arg6[%c0_14, %c0_15, %c0_16, %c0_17] : memref<1x8x8x64xf32, #tpu.memory_space<vmem>>, vector<1x8x8x64xf32>
    %16 = vector.shape_cast %15 : vector<1x8x8x64xf32> to vector<8x8x64xf32>
    %17 = vector.shape_cast %14 : vector<8x8x64xf32> to vector<1x8x8x64xf32>
    tpu.vector_store %arg6[%c0_14, %c0_15, %c0_16, %c0_17], %17 {strides = array<i32>} : memref<1x8x8x64xf32, #tpu.memory_space<vmem>>, vector<1x8x8x64xf32>,
    return
  }
  func.func @transform_0(%arg0: i32, %arg1: i32) -> (i32, i32, i32, i32) {
    %c0_i32 = arith.constant 0 : i32
    %c0_i32_0 = arith.constant 0 : i32
    %c0_i32_1 = arith.constant 0 : i32
    return %arg1, %arg0, %c0_i32, %c0_i32_0 : i32, i32, i32, i32
  }
  func.func @transform_1(%arg0: i32, %arg1: i32) -> (i32, i32, i32) {
    %c0_i32 = arith.constant 0 : i32
    %c0_i32_0 = arith.constant 0 : i32
    %c0_i32_1 = arith.constant 0 : i32
    return %arg0, %c0_i32, %c0_i32_0 : i32, i32, i32
  }
  func.func @transform_2(%arg0: i32, %arg1: i32) -> (i32, i32, i32, i32) {
    %c0_i32 = arith.constant 0 : i32
    %c0_i32_0 = arith.constant 0 : i32
    %c0_i32_1 = arith.constant 0 : i32
    return %arg1, %arg0, %c0_i32, %c0_i32_0 : i32, i32, i32, i32
  }
  func.func @transform_3(%arg0: i32, %arg1: i32) -> (i32, i32, i32, i32) {
    %c0_i32 = arith.constant 0 : i32
    %c0_i32_0 = arith.constant 0 : i32
    %c0_i32_1 = arith.constant 0 : i32
    return %arg1, %arg0, %c0_i32, %c0_i32_0 : i32, i32, i32, i32
  }
  func.func @transform_4(%arg0: i32, %arg1: i32) -> (i32, i32, i32, i32) {
    %c0_i32 = arith.constant 0 : i32
    %c0_i32_0 = arith.constant 0 : i32
    %c0_i32_1 = arith.constant 0 : i32
    return %arg1, %arg0, %c0_i32, %c0_i32_0 : i32, i32, i32, i32
  }
}

</mosaic_0001>

<bundles_post_ra>
// kernel: relative_position_encoder.1
= control target key start
LH: loop header
LB: loop body
LE: loop exit
PB: predicated region body
PF: predicated region fallthrough
CT: control target
= control target key end

     0   :  { %9 = vsyncpa [#allocation3], 0  ;;  %s5503_s0 = inlined_call_operand.vmem [shape: f32[2,8,8,32], index: 0, kind: input, shape index: {}]   ;;  %s5504_s1 = inlined_call_operand.vmem [shape: f32[8,8,32], index: 1, kind: input, shape index: {}]   ;;  %s5505_s2 = inlined_call_operand.vmem [shape: f32[2,8,8,8], index: 2, kind: input, shape index: {}]   ;;  %s5506_s3 = inlined_call_operand.vmem [shape: f32[2,8,8,64], index: 3, kind: input, shape index: {}]   ;;  %s5507_s4 = inlined_call_operand.hbm [shape: f32[2,8,8,64], index: 4, kind: output, shape index: {}]  }
   0x1   :  { %11 = vsyncpa [#allocation3 + $0x1], 0  ;;  %s4020_s15 = smov 0   ;;  %s4022_s16 = smov 0  }
   0x2   :  { %s4024_s17 = smov 0   ;;  %s4026_s18 = smov 0  }
   0x3   :  { %s4028_s19 = smov 0   ;;  %s4030_s20 = smov 0  }
   0x4 LB: > { %s3731_s21 = sadd.s32 4294967295, %s3979_s20   ;;  %s3732_s22 = sadd.s32 4294967294, %s3979_s20   ;;  %s3979_s20 = sphi %s4030_s20, %s17_s20   ;;  %s3975_s19 = sphi %s4028_s19, %s5529_s19   ;;  %s3971_s18 = sphi %s4026_s18, %s5528_s18   ;;  %s3967_s17 = sphi %s4024_s17, %s5527_s17   ;;  %s3963_s16 = sphi %s4022_s16, %s5526_s16   ;;  %s3959_s15 = sphi %s4020_s15, %s5525_s15  }
   0x5   : > { %s26_s23 = sadd.s32 1, %s3975_s19  ;;  %s148_s24 = sadd.s32 1, %s3967_s17 }
   0x6   : > { %p27_p0 = scmp.ge.s32.totalorder %s26_s23, 2  ;;  %p158_p1 = scmp.ne.s32.totalorder %s3967_s17, %s3963_s16 }
   0x7   : > { %p159_p2 = scmp.eq.s32.totalorder %s3731_s21, 1  ;;  %p164_p3 = scmp.ne.s32.totalorder %s3963_s16, %s3959_s15 }
   0x8   : > { %s5531_s23 = smov (%p27_p0, %s26_s23), 0  ;;  %p165_p5 = scmp.eq.s32.totalorder %s3732_s22, 1 }
   0x9   : > { %p4060_p4 = por %p159_p2, %p158_p1  ;;  %s143_s26 = ssub.s32 %s3975_s19, %s5531_s23 }
   0xa   : > { %p3736_p6 = scmp.ge.s32.totalorder %s3979_s20, 1  ;;  %p146_p7 = scmp.eq.s32.totalorder %s143_s26, 0 }
   0xb   : > { %p4067_p8 = por %p165_p5, %p164_p3  ;;  %p231_p9 = scmp.lt.s32.totalorder %s3979_s20, 3 }
   0xc   : > { %s4073_s28 = scalar_select %p146_p7, %s3967_s17, %s148_s24  }
   0xd   : > { %p232_p10 = pnand %p3736_p6, %p231_p9 }
   0xe   : > { %v329_v0 = vld [vmem:[%s5504_s1] sm:$0xff] (!%p232_p10)  ;;  %vm345_vm0 = vcmask (!%p232_p10), 261120   ;;  %p285_p11 = scmp.lt.s32.totalorder (!%p232_p10), %s3971_s18, 1  ;;  %v330_v1 = vld [vmem:[%s5504_s1 + $0x8] sm:$0xff] (!%p232_p10)  ;;  %v3981_v2 = vmov (!%p232_p10), 0.0   ;;  %vm3982_vm1 = vmmov (!%p232_p10), 0   ;;  %v954_v17 = vlaneseq (!%p232_p10) }
   0xf   : > { %235 = sbr.rel (%p232_p10) target bundleno = 649 (0x289), region = 36  ;;  %3785 = vmatprep.subr.mxu0 (!%p232_p10), %v3981_v2  ;;  %3787 = vmatprep.mubr.msk.f32.mxu0 (!%p232_p10), %vm3982_vm1, %v3981_v2  ;;  %v331_v3 = vld [vmem:[%s5504_s1 + $0x10] sm:$0xff] (!%p232_p10)  ;;  %v332_v6 = vld [vmem:[%s5504_s1 + $0x18] sm:$0xff] (!%p232_p10)  ;;  %v333_v9 = vld [vmem:[%s5504_s1 + $0x20] sm:$0xff] (!%p232_p10)  ;;  %s3986_s12 = smov (!%p232_p10), 8   ;;  %vm3498_vm2 = vcmask (!%p232_p10), 64512  }
  0x10   : > { %3786 = vmatpush3.xpose.msk.msra.mxu0 (!%p232_p10), %vm345_vm0, %v329_v0  ;;  %3790 = vmatprep.subr.mxu1 (!%p232_p10), %v3981_v2  ;;  %v334_v10 = vld [vmem:[%s5504_s1 + $0x28] sm:$0xff] (!%p232_p10)  ;;  %v335_v13 = vld [vmem:[%s5504_s1 + $0x30] sm:$0xff] (!%p232_p10)  ;;  %v336_v14 = vld [vmem:[%s5504_s1 + $0x38] sm:$0xff] (!%p232_p10)  ;;  %v4141_v18 = vshrl.u32 (!%p232_p10), %v954_v17, 7  ;;  %s3987_s13 = smov (!%p232_p10), 16   ;;  %s3988_s14 = smov (!%p232_p10), 24  }
  0x11   : > { %3791 = vmatpush3.xpose.msk.msra.mxu1 (!%p232_p10), %vm345_vm0, %v330_v1  ;;  %3792 = vmatprep.mubr.msk.f32.mxu1 (!%p232_p10), %vm3982_vm1, %v3981_v2  ;;  %s3989_s21 = smov (!%p232_p10), 32   ;;  %s3990_s22 = smov (!%p232_p10), 40   ;;  %vm3507_vm3 = vcmask (!%p232_p10), 130048   ;;  %vm3516_vm4 = vcmask (!%p232_p10), 195584   ;;  %vm3533_vm5 = vcmask (!%p232_p10), 326656   ;;  %vm3542_vm6 = vcmask (!%p232_p10), 392192  }
  0x12   : > { %3795 = vmatprep.subr.mxu0 (!%p232_p10), %v3981_v2  ;;  %3800 = vmatprep.subr.mxu1 (!%p232_p10), %v3981_v2  ;;  %v4144_v19 = vsub.s32 (!%p232_p10), 0, %v4141_v18  ;;  %v4147_v20 = vsub.s32 (!%p232_p10), 2, %v4141_v18  ;;  %v4154_v26 = vsub.s32 (!%p232_p10), 3, %v4141_v18  ;;  %v4157_v27 = vsub.s32 (!%p232_p10), 1, %v4141_v18  ;;  %s3991_s24 = smov (!%p232_p10), 48   ;;  %s3992_s26 = smov (!%p232_p10), 56  }
  0x13   : > { %v4160_v29 = vsub.s32 (!%p232_p10), 5, %v4141_v18  ;;  %v4163_v30 = vsub.s32 (!%p232_p10), 4, %v4141_v18  ;;  %v4170_v34 = vsub.s32 (!%p232_p10), 7, %v4141_v18  ;;  %v4173_v35 = vsub.s32 (!%p232_p10), 6, %v4141_v18  ;;  %s281_s29 = sand.u32 (!%p232_p10), 1, %s3963_s16   ;;  %s3768_s9 = sshll.u32 (!%p232_p10), %s3971_s18, 10 }
  0x14   : > { %vm3551_vm7 = vcmask (!%p232_p10), 457728   ;;  %vm3576_vm8 = vcmask (!%p232_p10), 523264  }
  0x16   : > { %s286_s7 = scalar_select %p285_p11, %s3971_s18, 1 }
  0x17   : > { %s5456_s18 = scalar_lea.sflag [#allocation3], %s281_s29 }
  0x18   : > { %s4087_s8 = sshll.u32 %s286_s7, 6  ;;  %s3737_s7 = sshll.u32 %s281_s29, 6 }
  0x19   : > { %s4093_s11 = scalar_lea.vmem %s5503_s0, %s4087_s8  ;;  %s5339_s6 = scalar_lea.vmem %s5506_s3, %s4087_s8 }
  0x1a   : > { %v321_v4 = vld [vmem:[%s4093_s11] sm:$0xff]  ;;  %v322_v5 = vld [vmem:[%s4093_s11 + $0x8] sm:$0xff]  ;;  %v323_v7 = vld [vmem:[%s4093_s11 + $0x10] sm:$0xff] }
  0x1b   : > { %3788 = vmatmul.mubr.msk.f32.vlgmr.msra.gmra.mrb[0].mxu0 %vm345_vm0, %v321_v4  ;;  %3793 = vmatmul.mubr.msk.f32.vlgmr.msra.gmra.mrb[0].mxu1 %vm345_vm0, %v322_v5  ;;  %v324_v8 = vld [vmem:[%s4093_s11 + $0x18] sm:$0xff]  ;;  %v325_v11 = vld [vmem:[%s4093_s11 + $0x20] sm:$0xff]  ;;  %v326_v12 = vld [vmem:[%s4093_s11 + $0x28] sm:$0xff] }
  0x1c   : > { %3796 = vmatpush3.xpose.msk.msra.mxu0 %vm345_vm0, %v331_v3  ;;  %3797 = vmatprep.mubr.msk.f32.mxu0 %vm3982_vm1, %v3981_v2  ;;  %v327_v15 = vld [vmem:[%s4093_s11 + $0x30] sm:$0xff]  ;;  %v328_v16 = vld [vmem:[%s4093_s11 + $0x38] sm:$0xff]  ;;  %s4342_s11 = scalar_lea.vmem %s5505_s2, %s4087_s8  ;;  %s5350_s8 = scalar_lea.vmem [#allocation2], %s3737_s7 }
  0x1d   : > { %3801 = vmatpush3.xpose.msk.msra.mxu1 %vm345_vm0, %v332_v6  ;;  %3802 = vmatprep.mubr.msk.f32.mxu1 %vm3982_vm1, %v3981_v2  ;;  %s3601_s10 = sshll.u32 %s5350_s8, 4  ;;  %s5450_s10 = int_to_ptr.vmem [resolvable:$true] %s3601_s10 }
  0x1e   : > { %3805 = vmatprep.subr.mxu0 %v3981_v2  ;;  %3810 = vmatprep.subr.mxu1 %v3981_v2 }
  0x1f   : > { %3798 = vmatmul.mubr.msk.f32.vlgmr.msra.gmra.mrb[2].mxu0 %vm345_vm0, %v323_v7 }
  0x20   : > { %3803 = vmatmul.mubr.msk.f32.vlgmr.msra.gmra.mrb[2].mxu1 %vm345_vm0, %v324_v8  ;;  %3806 = vmatpush3.xpose.msk.msra.mxu0 %vm345_vm0, %v333_v9 }
  0x21   : > { %3807 = vmatprep.mubr.msk.f32.mxu0 %vm3982_vm1, %v3981_v2  ;;  %3811 = vmatpush3.xpose.msk.msra.mxu1 %vm345_vm0, %v334_v10 }
  0x22   : > { %3812 = vmatprep.mubr.msk.f32.mxu1 %vm3982_vm1, %v3981_v2  ;;  %3815 = vmatprep.subr.mxu0 %v3981_v2 }
  0x23   : > { %3808 = vmatmul.mubr.msk.f32.vlgmr.msra.gmra.mrb[4].mxu0 %vm345_vm0, %v325_v11  ;;  %3820 = vmatprep.subr.mxu1 %v3981_v2 }
  0x24   : > { %3813 = vmatmul.mubr.msk.f32.vlgmr.msra.gmra.mrb[4].mxu1 %vm345_vm0, %v326_v12  ;;  %3816 = vmatpush3.xpose.msk.msra.mxu0 %vm345_vm0, %v335_v13 }
  0x25   : > { %3817 = vmatprep.mubr.msk.f32.mxu0 %vm3982_vm1, %v3981_v2  ;;  %3821 = vmatpush3.xpose.msk.msra.mxu1 %vm345_vm0, %v336_v14 }
  0x26   : > { %3822 = vmatprep.mubr.msk.f32.mxu1 %vm3982_vm1, %v3981_v2 }
  0x27   : > { %3818 = vmatmul.mubr.msk.f32.vlgmr.msra.gmra.mrb[6].mxu0 %vm345_vm0, %v327_v15 }
  0x28   : > { %3823 = vmatmul.mubr.msk.f32.vlgmr.msra.gmra.mrb[6].mxu1 %vm345_vm0, %v328_v16 }
  0xee   : > { %v418_v21 = vpop.f32.mrb[0].mxu0  ;;  %v4149_v22 = vpop.f32.mrb[0].mxu1 }
  0xef   : > { %v3789_v23 = vpop.f32.mrb[1].mxu0  ;;  %v971_v24 = vrot.slane %v418_v21, %v4147_v20  ;;  %v957_v25 = vrot.slane %v418_v21, %v4144_v19  ;;  %v3794_v28 = vpop.f32.mrb[1].mxu1  ;;  %v978_v32 = vrot.slane %v418_v21, %v4154_v26  ;;  %v964_v33 = vrot.slane %v418_v21, %v4157_v27 }
  0xf0   : > { %v992_v40 = vrot.slane %v418_v21, %v4160_v29  ;;  %v985_v41 = vrot.slane %v418_v21, %v4163_v30  ;;  %v1006_v42 = vrot.slane %v418_v21, %v4170_v34  ;;  %v999_v43 = vrot.slane %v418_v21, %v4173_v35 }
  0xf1   : > { %973 = vbcast.lane.b32.xlu1 %v971_v24, 256  ;;  %959 = vbcast.lane.b32.xlu0 %v957_v25, 256  ;;  %v1020_v54 = vrot.slane %v4149_v22, %v4157_v27  ;;  %v1013_v1 = vrot.slane %v4149_v22, %v4144_v19  ;;  %v1034_v16 = vrot.slane %v4149_v22, %v4154_v26 }
  0xf2   : > { %v4165_v31 = vpop.f32.mrb[2].mxu0  ;;  %v1027_v17 = vrot.slane %v4149_v22, %v4147_v20  ;;  %v1048_v21 = vrot.slane %v4149_v22, %v4160_v29  ;;  %v1041_v23 = vrot.slane %v4149_v22, %v4163_v30  ;;  %v1062_v24 = vrot.slane %v4149_v22, %v4170_v34 }
  0xf3   : > { %v3799_v36 = vpop.f32.mrb[3].mxu0  ;;  %v4175_v37 = vpop.f32.mrb[2].mxu1  ;;  %v1055_v25 = vrot.slane %v4149_v22, %v4173_v35  ;;  %v1076_v28 = vrot.slane %v4165_v31, %v4157_v27  ;;  %v1104_v22 = vrot.slane %v4165_v31, %v4160_v29 }
  0xf4   : > { %v3804_v38 = vpop.f32.mrb[3].mxu1  ;;  %v1083_v36 = vrot.slane %v4165_v31, %v4147_v20 }
  0xf5   : > { %980 = vbcast.lane.b32.xlu1 %v978_v32, 256  ;;  %966 = vbcast.lane.b32.xlu0 %v964_v33, 256  ;;  %v1069_v32 = vrot.slane %v4165_v31, %v4144_v19  ;;  %v1090_v33 = vrot.slane %v4165_v31, %v4154_v26  ;;  %v1097_v38 = vrot.slane %v4165_v31, %v4163_v30 }
  0xf6   : > { %v4177_v39 = vpop.f32.mrb[4].mxu0 }
  0xf7   : > { %v3809_v44 = vpop.f32.mrb[5].mxu0  ;;  %v4183_v45 = vpop.f32.mrb[4].mxu1  ;;  %v1202_v46 = vrot.slane %v4177_v39, %v4154_v26  ;;  %v1195_v47 = vrot.slane %v4177_v39, %v4147_v20  ;;  %v1216_v48 = vrot.slane %v4177_v39, %v4160_v29  ;;  %v1209_v49 = vrot.slane %v4177_v39, %v4163_v30 }
  0xf8   : > { %v3814_v50 = vpop.f32.mrb[5].mxu1  ;;  %v1230_v51 = vrot.slane %v4177_v39, %v4170_v34  ;;  %v1223_v52 = vrot.slane %v4177_v39, %v4173_v35  ;;  %v1244_v53 = vrot.slane %v4183_v45, %v4157_v27  ;;  %v1258_v55 = vrot.slane %v4183_v45, %v4154_v26 }
  0xf9   : > { %994 = vbcast.lane.b32.xlu1 %v992_v40, 256  ;;  %987 = vbcast.lane.b32.xlu0 %v985_v41, 256  ;;  %v1251_v56 = vrot.slane %v4183_v45, %v4147_v20  ;;  %v1272_v57 = vrot.slane %v4183_v45, %v4160_v29  ;;  %v1265_v59 = vrot.slane %v4183_v45, %v4163_v30 }
  0xfa   : > { %v4207_v58 = vpop.f32.mrb[6].mxu0  ;;  %v1286_v60 = vrot.slane %v4183_v45, %v4170_v34  ;;  %v1279_v61 = vrot.slane %v4183_v45, %v4173_v35  ;;  %v1118_v40 = vrot.slane %v4165_v31, %v4170_v34  ;;  %v1111_v41 = vrot.slane %v4165_v31, %v4173_v35 }
  0xfb   : > { %v3819_v62 = vpop.f32.mrb[7].mxu0  ;;  %v1300_v63 = vrot.slane %v4207_v58, %v4157_v27  ;;  %v4217_v0 = vpop.f32.mrb[6].mxu1  ;;  %v1314_v2 = vrot.slane %v4207_v58, %v4154_v26  ;;  %v1307_v3 = vrot.slane %v4207_v58, %v4147_v20  ;;  %v1328_v4 = vrot.slane %v4207_v58, %v4160_v29 }
  0xfc   : > { %v3824_v5 = vpop.f32.mrb[7].mxu1  ;;  %v1321_v6 = vrot.slane %v4207_v58, %v4163_v30  ;;  %v1342_v7 = vrot.slane %v4207_v58, %v4170_v34  ;;  %v1335_v8 = vrot.slane %v4207_v58, %v4173_v35  ;;  %v1356_v9 = vrot.slane %v4217_v0, %v4157_v27 }
  0xfd   : > { %1008 = vbcast.lane.b32.xlu1 %v1006_v42, 256  ;;  %1001 = vbcast.lane.b32.xlu0 %v999_v43, 256  ;;  %v1370_v10 = vrot.slane %v4217_v0, %v4154_v26  ;;  %v1363_v11 = vrot.slane %v4217_v0, %v4147_v20  ;;  %v1384_v12 = vrot.slane %v4217_v0, %v4160_v29 }
  0xfe   : > { %v1377_v13 = vrot.slane %v4217_v0, %v4163_v30  ;;  %v1398_v14 = vrot.slane %v4217_v0, %v4170_v34  ;;  %v1391_v15 = vrot.slane %v4217_v0, %v4173_v35  ;;  %v1132_v42 = vrot.slane %v4175_v37, %v4157_v27 }
  0xff   : > { %v1125_v43 = vrot.slane %v4175_v37, %v4144_v19  ;;  %v1146_v44 = vrot.slane %v4175_v37, %v4154_v26  ;;  %v1139_v50 = vrot.slane %v4175_v37, %v4147_v20  ;;  %v1160_v31 = vrot.slane %v4175_v37, %v4160_v29  ;;  %v340_v20 = vld [vmem:[%s4342_s11 + $0x18] sm:$0xff] }
 0x100   : > { %v1174_v62 = vrot.slane %v4175_v37, %v4170_v34  ;;  %v1188_v5 = vrot.slane %v4177_v39, %v4157_v27 }
 0x101   : > { %1022 = vbcast.lane.b32.xlu1 %v1020_v54, 256  ;;  %1015 = vbcast.lane.b32.xlu0 %v1013_v1, 256  ;;  %v1153_v54 = vrot.slane %v4175_v37, %v4163_v30  ;;  %v1167_v1 = vrot.slane %v4175_v37, %v4173_v35  ;;  %v1237_v37 = vrot.slane %v4183_v45, %v4144_v19  ;;  %v337_v45 = vld [vmem:[%s4342_s11] sm:$0xff] }
 0x105   : > { %1036 = vbcast.lane.b32.xlu1 %v1034_v16, 256  ;;  %1029 = vbcast.lane.b32.xlu0 %v1027_v17, 256  ;;  %v1181_v16 = vrot.slane %v4177_v39, %v4144_v19 }
 0x109   : > { %1050 = vbcast.lane.b32.xlu1 %v1048_v21, 256  ;;  %1043 = vbcast.lane.b32.xlu0 %v1041_v23, 256 }
 0x10d   : > { %1064 = vbcast.lane.b32.xlu1 %v1062_v24, 256  ;;  %1057 = vbcast.lane.b32.xlu0 %v1055_v25, 256 }
 0x111   : > { %1078 = vbcast.lane.b32.xlu1 %v1076_v28, 256  ;;  %1071 = vbcast.lane.b32.xlu0 %v1069_v32, 256 }
 0x115   : > { %1092 = vbcast.lane.b32.xlu1 %v1090_v33, 256  ;;  %1085 = vbcast.lane.b32.xlu0 %v1083_v36, 256 }
 0x119   : > { %1106 = vbcast.lane.b32.xlu1 %v1104_v22, 256  ;;  %1099 = vbcast.lane.b32.xlu0 %v1097_v38, 256 }
 0x11d   : > { %1120 = vbcast.lane.b32.xlu1 %v1118_v40, 256  ;;  %1113 = vbcast.lane.b32.xlu0 %v1111_v41, 256 }
 0x121   : > { %1134 = vbcast.lane.b32.xlu1 %v1132_v42, 256  ;;  %1127 = vbcast.lane.b32.xlu0 %v1125_v43, 256 }
 0x125   : > { %1148 = vbcast.lane.b32.xlu1 %v1146_v44, 256  ;;  %1141 = vbcast.lane.b32.xlu0 %v1139_v50, 256 }
 0x129   : > { %1162 = vbcast.lane.b32.xlu1 %v1160_v31, 256  ;;  %1155 = vbcast.lane.b32.xlu0 %v1153_v54, 256 }
 0x12d   : > { %1176 = vbcast.lane.b32.xlu1 %v1174_v62, 256  ;;  %1169 = vbcast.lane.b32.xlu0 %v1167_v1, 256 }
 0x131   : > { %1190 = vbcast.lane.b32.xlu1 %v1188_v5, 256  ;;  %1183 = vbcast.lane.b32.xlu0 %v1181_v16, 256 }
 0x135   : > { %1204 = vbcast.lane.b32.xlu1 %v1202_v46, 256  ;;  %1197 = vbcast.lane.b32.xlu0 %v1195_v47, 256  ;;  %v3983_v46 = vmov 1966171168  }
 0x136   : > { %v1412_v47 = vunpack.c.l.s4 %v3983_v46 }
 0x138   : > { %v1413_v39 = vunpack.c.0.s8 %v1412_v47 }
 0x139   : > { %1218 = vbcast.lane.b32.xlu1 %v1216_v48, 256  ;;  %1211 = vbcast.lane.b32.xlu0 %v1209_v49, 256  ;;  %v1293_v48 = vrot.slane %v4207_v58, %v4144_v19 }
 0x13a   : > { %v4345_v49 = vsub.s32 %v1413_v39, %v4141_v18 }
 0x13d   : > { %1232 = vbcast.lane.b32.xlu1 %v1230_v51, 256  ;;  %1225 = vbcast.lane.b32.xlu0 %v1223_v52, 256  ;;  %v1410_v51 = vcombine.high %v337_v45, %v337_v45  ;;  %v1417_v52 = vrot.slane %v337_v45, %v4345_v49 }
 0x141   : > { %1246 = vbcast.lane.b32.xlu1 %v1244_v53, 256  ;;  %1239 = vbcast.lane.b32.xlu0 %v1237_v37, 256  ;;  %v1425_v53 = vcombine.high %v1417_v52, %v1417_v52 }
 0x145   : > { %1260 = vbcast.lane.b32.xlu1 %v1258_v55, 256  ;;  %1253 = vbcast.lane.b32.xlu0 %v1251_v56, 256  ;;  %v1424_v55 = vrot.slane %v1410_v51, %v4345_v49  ;;  %v338_v56 = vld [vmem:[%s4342_s11 + $0x8] sm:$0xff] }
 0x146   : > { %v1466_v17 = vrot.slane %v338_v56, %v4345_v49  ;;  %v1459_v21 = vcombine.high %v338_v56, %v338_v56 }
 0x148   : > { %v1474_v33 = vcombine.high %v1466_v17, %v1466_v17  ;;  %v1473_v58 = vrot.slane %v1459_v21, %v4345_v49 }
 0x149   : > { %1274 = vbcast.lane.b32.xlu1 %v1272_v57, 256  ;;  %1267 = vbcast.lane.b32.xlu0 %v1265_v59, 256  ;;  %v3984_v57 = vmov 1983009808  }
 0x14a   : > { %v2189_v59 = vunpack.c.l.s4 %v3984_v57  ;;  %v4407_v44 = vrot.slane %v1474_v33, %v4345_v49  ;;  %v1475_v31 = vcombine.high %v1473_v58, %v1473_v58  ;;  %v4440_v51 = vrot.slane %v1473_v58, %v4345_v49 }
 0x14c   : > { %v2190_v23 = vunpack.c.0.s8 %v2189_v59  ;;  %v1841_v39 = vrot.slane %v4407_v44, %v4144_v19  ;;  %v1506_v45 = vcombine.high %v4407_v44, %v4407_v44 }
 0x14d   : > { %1288 = vbcast.lane.b32.xlu1 %v1286_v60, 256  ;;  %1281 = vbcast.lane.b32.xlu0 %v1279_v61, 256  ;;  %v3985_v60 = vmov 1934713408  }
 0x14e   : > { %v2253_v61 = vunpack.c.l.s4 %v3985_v60  ;;  %v4394_v22 = vsub.s32 %v2190_v23, %v4141_v18  ;;  %v1564_v60 = vrot.slane %v340_v20, %v4345_v49  ;;  %v4473_v30 = vrot.slane %v1506_v45, %v4144_v19 }
 0x150   : > { %v2254_v24 = vunpack.c.0.s8 %v2253_v61 }
 0x151   : > { %1302 = vbcast.lane.b32.xlu1 %v1300_v63, 256  ;;  %1295 = vbcast.lane.b32.xlu0 %v1293_v48, 256  ;;  %v4367_v63 = vrot.slane %v1417_v52, %v4345_v49  ;;  %v4443_v52 = vrot.slane %v1475_v31, %v4345_v49  ;;  %v4523_v31 = vrot.slane %v1564_v60, %v4345_v49 }
 0x152   : > { %v4397_v38 = vsub.s32 %v2254_v24, %v4141_v18  ;;  %v4410_v18 = vrot.slane %v1466_v17, %v4345_v49 }
 0x153   : > { %v1455_v25 = vcombine.high %v4367_v63, %v4367_v63  ;;  %v1805_v27 = vrot.slane %v4367_v63, %v4144_v19  ;;  %v1505_v63 = vcombine.high %v4440_v51, %v4440_v51  ;;  %v1857_v33 = vrot.slane %v4443_v52, %v4144_v19 }
 0x154   : > { %v1504_v26 = vcombine.high %v4410_v18, %v4410_v18  ;;  %v1837_v48 = vrot.slane %v4410_v18, %v4144_v19 }
 0x155   : > { %1316 = vbcast.lane.b32.xlu1 %v1314_v2, 256  ;;  %1309 = vbcast.lane.b32.xlu0 %v1307_v3, 256  ;;  %v1447_v2 = vrot.slane %v1425_v53, %v4345_v49  ;;  %v1426_v3 = vcombine.high %v1424_v55, %v1424_v55  ;;  %v1813_v42 = vrot.slane %v1455_v25, %v4144_v19 }
 0x156   : > { %v4462_v61 = vrot.slane %v1504_v26, %v4144_v19 }
 0x157   : > { %v1457_v28 = vcombine.high %v1447_v2, %v1447_v2  ;;  %v4383_v32 = vrot.slane %v1426_v3, %v4345_v49  ;;  %v1809_v1 = vrot.slane %v1447_v2, %v4144_v19  ;;  %v1557_v3 = vcombine.high %v340_v20, %v340_v20 }
 0x159   : > { %1330 = vbcast.lane.b32.xlu1 %v1328_v4, 256  ;;  %1323 = vbcast.lane.b32.xlu0 %v1321_v6, 256  ;;  %v1349_v4 = vrot.slane %v4217_v0, %v4144_v19  ;;  %v339_v6 = vld [vmem:[%s4342_s11 + $0x10] sm:$0xff]  ;;  %v1458_v40 = vcombine.high %v4383_v32, %v4383_v32  ;;  %v1817_v50 = vrot.slane %v1457_v28, %v4144_v19 }
 0x15a   : > { %v1508_v36 = vcombine.high %v339_v6, %v339_v6  ;;  %v1825_v5 = vrot.slane %v4383_v32, %v4144_v19  ;;  %v1572_v32 = vcombine.high %v1564_v60, %v1564_v60  ;;  %v1571_v34 = vrot.slane %v1557_v3, %v4345_v49 }
 0x15b   : > { %v1833_v37 = vrot.slane %v1458_v40, %v4144_v19 }
 0x15c   : > { %v1522_v62 = vrot.slane %v1508_v36, %v4345_v49 }
 0x15d   : > { %1344 = vbcast.lane.b32.xlu1 %v1342_v7, 256  ;;  %1337 = vbcast.lane.b32.xlu0 %v1335_v8, 256  ;;  %v4386_v7 = vrot.slane %v1424_v55, %v4345_v49  ;;  %v1515_v8 = vrot.slane %v339_v6, %v4345_v49 }
 0x15e   : > { %v1524_v56 = vcombine.high %v1522_v62, %v1522_v62 }
 0x15f   : > { %v1456_v41 = vcombine.high %v4386_v7, %v4386_v7  ;;  %v1523_v54 = vcombine.high %v1515_v8, %v1515_v8  ;;  %v1821_v16 = vrot.slane %v4386_v7, %v4144_v19  ;;  %v4500_v7 = vrot.slane %v1505_v63, %v4144_v19 }
 0x160   : > { %v4495_v28 = vrot.slane %v1524_v56, %v4345_v49 }
 0x161   : > { %1358 = vbcast.lane.b32.xlu1 %v1356_v9, 256  ;;  %1351 = vbcast.lane.b32.xlu0 %v1349_v4, 256  ;;  %v1829_v46 = vrot.slane %v1456_v41, %v4144_v19  ;;  %v4446_v53 = vrot.slane %v1523_v54, %v4345_v49  ;;  %v1853_v4 = vrot.slane %v4440_v51, %v4144_v19  ;;  %v341_v54 = vld [vmem:[%s4342_s11 + $0x20] sm:$0xff] }
 0x162   : > { %v1556_v36 = vcombine.high %v4495_v28, %v4495_v28  ;;  %v1613_v60 = vrot.slane %v341_v54, %v4345_v49 }
 0x163   : > { %v974_v43 = vpop.permute.xlu1 %973  ;;  %v960_v9 = vpop.permute.xlu0 %959  ;;  %v1555_v2 = vcombine.high %v4446_v53, %v4446_v53  ;;  %v1873_v6 = vrot.slane %v4446_v53, %v4144_v19 }
 0x164   : > { %v4468_v17 = vadd.f32 %v1813_v42, %v974_v43  ;;  %v4470_v29 = vadd.f32 %v1805_v27, %v960_v9  ;;  %v4538_v56 = vrot.slane %v1556_v36, %v4144_v19  ;;  %v4603_v44 = vrot.slane %v1613_v60, %v4345_v49 }
 0x165   : > { %1372 = vbcast.lane.b32.xlu1 %v1370_v10, 256  ;;  %1365 = vbcast.lane.b32.xlu0 %v1363_v11, 256  ;;  %v4430_v10 = vrot.slane %v1515_v8, %v4345_v49  ;;  %v4503_v58 = vrot.slane %v1555_v2, %v4144_v19  ;;  %v4512_v8 = vrot.slane %v1522_v62, %v4345_v49 }
 0x166   : > { %v2186_v35 = vcombine.low %v4470_v29, %v4468_v17 }
 0x167   : > { %v981_v11 = vpop.permute.xlu1 %980  ;;  %v967_v47 = vpop.permute.xlu0 %966  ;;  %v1553_v55 = vcombine.high %v4430_v10, %v4430_v10  ;;  %v1554_v9 = vcombine.high %v4512_v8, %v4512_v8 }
 0x168   : > { %v4450_v57 = vadd.f32 %v1817_v50, %v981_v11  ;;  %v4452_v59 = vadd.f32 %v1809_v1, %v967_v47  ;;  %v4520_v50 = vrot.slane %v1572_v32, %v4345_v49  ;;  %v1602_v47 = vcombine.high %v4523_v31, %v4523_v31 }
 0x169   : > { %1386 = vbcast.lane.b32.xlu1 %v1384_v12, 256  ;;  %1379 = vbcast.lane.b32.xlu0 %v1377_v13, 256  ;;  %v1507_v13 = vcombine.high %v4443_v52, %v4443_v52  ;;  %v4484_v24 = vrot.slane %v1553_v55, %v4144_v19  ;;  %v4542_v2 = vrot.slane %v1554_v9, %v4144_v19 }
 0x16a   : > { %v2202_v25 = vcombine.low %v4452_v59, %v4450_v57  ;;  %v1604_v11 = vcombine.high %v4520_v50, %v4520_v50  ;;  %v4555_v9 = vrot.slane %v1602_v47, %v4144_v19 }
 0x16b   : > { %v995_v12 = vpop.permute.xlu1 %994  ;;  %v988_v21 = vpop.permute.xlu0 %987 }
 0x16c   : > { %v2127_v40 = vadd.f32 %v1825_v5, %v995_v12  ;;  %v2126_v41 = vadd.f32 %v1821_v16, %v988_v21  ;;  %v2210_v27 = vrot.slane %v2202_v25, %v4394_v22  ;;  %v1573_v16 = vcombine.high %v1571_v34, %v1571_v34 }
 0x16d   : > { %1400 = vbcast.lane.b32.xlu1 %v1398_v14, 256  ;;  %1393 = vbcast.lane.b32.xlu0 %v1391_v15, 256  ;;  %v4509_v15 = vrot.slane %v1507_v13, %v4144_v19  ;;  %v4552_v36 = vrot.slane %v1604_v11, %v4144_v19 }
 0x16e   : > { %v4549_v32 = vrot.slane %v1573_v16, %v4345_v49 }
 0x16f   : > { %v1009_v0 = vpop.permute.xlu1 %1008  ;;  %v1002_v14 = vpop.permute.xlu0 %1001 }
 0x170   : > { %v2129_v42 = vadd.f32 %v1833_v37, %v1009_v0  ;;  %v2128_v43 = vadd.f32 %v1829_v46, %v1002_v14  ;;  %v2194_v37 = vrot.slane %v2186_v35, %v4394_v22 }
 0x172   : > { %v2234_v62 = vcombine.low %v2127_v40, %v2129_v42  ;;  %v2218_v1 = vcombine.low %v2126_v41, %v2128_v43  ;;  %v2250_v63 = vcombine.low %v2194_v37, %v2210_v27  ;;  %v2235_v21 = vcombine.high %v2127_v40, %v2129_v42 }
 0x173   : > { %v1023_v46 = vpop.permute.xlu1 %1022  ;;  %v1016_v26 = vpop.permute.xlu0 %1015  ;;  %v2219_v13 = vcombine.high %v2126_v41, %v2128_v43  ;;  %v2203_v40 = vcombine.high %v4452_v59, %v4450_v57  ;;  %v1621_v42 = vcombine.high %v1613_v60, %v1613_v60  ;;  %v1606_v43 = vcombine.high %v341_v54, %v341_v54 }
 0x174   : > { %v2242_v45 = vrot.slane %v2234_v62, %v4394_v22  ;;  %v2226_v55 = vrot.slane %v2218_v1, %v4394_v22  ;;  %v4558_v62 = vrot.slane %v1571_v34, %v4345_v49  ;;  %v2251_v1 = vcombine.high %v2194_v37, %v2210_v27 }
 0x175   : > { %v4572_v47 = vrot.slane %v2250_v63, %v4397_v38  ;;  %v2187_v34 = vcombine.high %v4470_v29, %v4468_v17  ;;  %v4577_v57 = vrot.slane %v2235_v21, %v4394_v22  ;;  %v4580_v59 = vrot.slane %v2219_v13, %v4394_v22 }
 0x176   : > { %v2282_v25 = vcombine.low %v2226_v55, %v2242_v45  ;;  %v2283_v35 = vcombine.high %v2226_v55, %v2242_v45  ;;  %v4600_v55 = vrot.slane %v1621_v42, %v4345_v49  ;;  %v1620_v18 = vrot.slane %v1606_v43, %v4345_v49  ;;  %v4639_v45 = vld [vmem:[%s4342_s11 + $0x28] sm:$0xff] }
 0x177   : > { %v1037_v0 = vpop.permute.xlu1 %1036  ;;  %v1030_v14 = vpop.permute.xlu0 %1029  ;;  %v1605_v60 = vcombine.high %v4549_v32, %v4549_v32  ;;  %v1603_v63 = vcombine.high %v4558_v62, %v4558_v62  ;;  %v1651_v13 = vcombine.high %v4603_v44, %v4603_v44 }
 0x178   : > { %v4563_v41 = vrot.slane %v2282_v25, %v4397_v38  ;;  %v4566_v16 = vadd.f32 %v4473_v30, %v1037_v0  ;;  %v4569_v11 = vadd.f32 %v4462_v61, %v1030_v14  ;;  %v4587_v61 = vadd.f32 %v1841_v39, %v1023_v46 }
 0x179   : > { %v4592_v30 = vadd.f32 %v1837_v48, %v1016_v26  ;;  %v2297_v37 = vrot.slane %v2283_v35, %v4397_v38  ;;  %v4607_v39 = vrot.slane %v2203_v40, %v4394_v22  ;;  %v2265_v26 = vrot.slane %v2251_v1, %v4397_v38 }
 0x17a   : > { %v2315_v54 = vcombine.high %v4572_v47, %v4563_v41  ;;  %v2338_v48 = vcombine.low %v4587_v61, %v4566_v16  ;;  %v1653_v21 = vcombine.high %v4600_v55, %v4600_v55  ;;  %v4624_v25 = vrot.slane %v2187_v34, %v4394_v22 }
 0x17b   : > { %v1051_v17 = vpop.permute.xlu1 %1050  ;;  %v1044_v29 = vpop.permute.xlu0 %1043  ;;  %v2322_v46 = vcombine.low %v4592_v30, %v4569_v11  ;;  %v2298_v35 = vcombine.low %v4580_v59, %v4577_v57  ;;  %v2316_v40 = vcombine.low %v2265_v26, %v2297_v37  ;;  %v1622_v51 = vcombine.high %v1620_v18, %v1620_v18 }
 0x17c   : > { %3282 = vrot.lane.b32.xlu0 %v2315_v54, %s3986_s12  ;;  %v2135_v43 = vadd.f32 %v1857_v33, %v1051_v17  ;;  %v2134_v1 = vadd.f32 %v1853_v4, %v1044_v29  ;;  %v2266_v27 = vcombine.low %v4624_v25, %v4607_v39  ;;  %v4644_v12 = vrot.slane %v2338_v48, %v4394_v22 }
 0x17d   : > { %v4647_v42 = vrot.slane %v2322_v46, %v4394_v22  ;;  %v4651_v33 = vrot.slane %v1605_v60, %v4144_v19  ;;  %v2317_v29 = vcombine.high %v2265_v26, %v2297_v37  ;;  %v2306_v48 = vrot.slane %v2298_v35, %v4397_v38 }
 0x17e   : > { %v2274_v26 = vrot.slane %v2266_v27, %v4397_v38  ;;  %v4675_v35 = vrot.slane %v1651_v13, %v4144_v19  ;;  %v2267_v13 = vcombine.high %v4624_v25, %v4607_v39 }
 0x17f   : > { %v1065_v0 = vpop.permute.xlu1 %1064  ;;  %v1058_v14 = vpop.permute.xlu0 %1057  ;;  %v2386_v37 = vcombine.low %v4647_v42, %v4644_v12 }
 0x180   : > { %v2137_v34 = vadd.f32 %v4509_v15, %v1065_v0  ;;  %v2136_v54 = vadd.f32 %v4500_v7, %v1058_v14  ;;  %3314 = vrot.lane.b32.xlu0 %v2316_v40, %s3987_s13  ;;  %v4654_v7 = vrot.slane %v1603_v63, %v4144_v19  ;;  %v4661_v0 = vrot.slane %v4639_v45, %v4345_v49 }
 0x181   : > { %v4668_v40 = vrot.slane %v1653_v21, %v4144_v19  ;;  %v2318_v23 = vcombine.low %v2274_v26, %v2306_v48  ;;  %v2281_v53 = vrot.slane %v2267_v13, %v4397_v38 }
 0x182   : > { %v2370_v52 = vcombine.low %v2135_v43, %v2137_v34  ;;  %v2354_v4 = vcombine.low %v2134_v1, %v2136_v54  ;;  %v2371_v63 = vcombine.high %v2135_v43, %v2137_v34  ;;  %v2355_v21 = vcombine.high %v2134_v1, %v2136_v54 }
 0x183   : > { %v1079_v15 = vpop.permute.xlu1 %1078  ;;  %v1072_v17 = vpop.permute.xlu0 %1071  ;;  %v1670_v27 = vcombine.high %v4661_v0, %v4661_v0  ;;  %v2387_v43 = vcombine.high %v4647_v42, %v4644_v12 }
 0x184   : > { %v2378_v14 = vrot.slane %v2370_v52, %v4394_v22  ;;  %v2362_v60 = vrot.slane %v2354_v4, %v4394_v22  ;;  %3346 = vrot.lane.b32.xlu0 %v2317_v29, %s3988_s14  ;;  %v4678_v52 = vrot.slane %v1622_v51, %v4345_v49  ;;  %v2299_v4 = vcombine.high %v4580_v59, %v4577_v57 }
 0x185   : > { %v4683_v29 = vrot.slane %v1620_v18, %v4345_v49  ;;  %v2339_v51 = vcombine.high %v4587_v61, %v4566_v16  ;;  %v2323_v57 = vcombine.high %v4592_v30, %v4569_v11  ;;  %v4706_v16 = vrot.slane %v2386_v37, %v4397_v38 }
 0x186   : > { %v2418_v46 = vcombine.low %v2362_v60, %v2378_v14  ;;  %v2419_v3 = vcombine.high %v2362_v60, %v2378_v14  ;;  %v4709_v11 = vrot.slane %v2371_v63, %v4394_v22  ;;  %v4712_v61 = vrot.slane %v2355_v21, %v4394_v22 }
 0x187   : > { %v1093_v20 = vpop.permute.xlu1 %1092  ;;  %v1086_v5 = vpop.permute.xlu0 %1085  ;;  %v2319_v30 = vcombine.high %v2274_v26, %v2306_v48  ;;  %v2313_v12 = vrot.slane %v2299_v4, %v4397_v38  ;;  %v4729_v42 = vrot.slane %v2339_v51, %v4394_v22  ;;  %v4732_v34 = vrot.slane %v2323_v57, %v4394_v22 }
 0x188   : > { %v4694_v59 = vrot.slane %v2418_v46, %v4397_v38  ;;  %v4699_v18 = vadd.f32 %v4503_v58, %v1093_v20  ;;  %v4702_v1 = vadd.f32 %v4484_v24, %v1086_v5  ;;  %3378 = vrot.lane.b32.xlu0 %v2318_v23, %s3989_s21  ;;  %v4718_v24 = vadd.f32 %v1873_v6, %v1079_v15 }
 0x189   : > { %v5510_v23 = vrot.slane %v4430_v10, %v4144_v19  ;;  %v2433_v25 = vrot.slane %v2419_v3, %v4397_v38  ;;  %v1953_v10 = vrot.slane %v4678_v52, %v4144_v19  ;;  %v2401_v3 = vrot.slane %v2387_v43, %v4397_v38 }
 0x18a   : > { %v2451_v39 = vcombine.high %v4706_v16, %v4694_v59  ;;  %v2474_v6 = vcombine.low %v4718_v24, %v4699_v18  ;;  %v1654_v15 = vcombine.high %v4678_v52, %v4678_v52  ;;  %v4749_v48 = vrot.slane %v1670_v27, %v4345_v49 }
 0x18b   : > { %v4723_v58 = vadd.f32 %v5510_v23, %v1072_v17  ;;  %v1107_v5 = vpop.permute.xlu1 %1106  ;;  %v1100_v20 = vpop.permute.xlu0 %1099  ;;  %v1652_v17 = vcombine.high %v4683_v29, %v4683_v29  ;;  %v1655_v46 = vcombine.high %v4639_v45, %v4639_v45  ;;  %v2434_v14 = vcombine.low %v4712_v61, %v4709_v11 }
 0x18c   : > { %3284 = vrot.lane.b32.xlu1 %v2451_v39, %s3986_s12  ;;  %3410 = vrot.lane.b32.xlu0 %v2319_v30, %s3990_s22  ;;  %v2452_v37 = vcombine.low %v2401_v3, %v2433_v25  ;;  %v2320_v26 = vcombine.low %v2281_v53, %v2313_v12  ;;  %v5511_v21 = vrot.slane %v4495_v28, %v4144_v19 }
 0x18d   : > { %v2458_v54 = vcombine.low %v4723_v58, %v4702_v1  ;;  %v5512_v27 = vrot.slane %v4512_v8, %v4144_v19  ;;  %v2402_v43 = vcombine.low %v4732_v34, %v4729_v42  ;;  %v4768_v30 = vrot.slane %v2474_v6, %v4394_v22 }
 0x18e   : > { %v2143_v13 = vadd.f32 %v5511_v21, %v1107_v5  ;;  %v2453_v39 = vcombine.high %v2401_v3, %v2433_v25  ;;  %v2321_v6 = vcombine.high %v2281_v53, %v2313_v12  ;;  %v4789_v21 = vrot.slane %v1652_v17, %v4144_v19 }
 0x18f   : > { %v1121_v60 = vpop.permute.xlu1 %1120  ;;  %v1114_v63 = vpop.permute.xlu0 %1113  ;;  %v2142_v51 = vadd.f32 %v5512_v27, %v1100_v20  ;;  %v4771_v23 = vrot.slane %v2458_v54, %v4394_v22  ;;  %v2442_v54 = vrot.slane %v2434_v14, %v4397_v38  ;;  %v2410_v12 = vrot.slane %v2402_v43, %v4397_v38 }
 0x190   : > { %v2145_v45 = vadd.f32 %v4538_v56, %v1121_v60  ;;  %v2144_v57 = vadd.f32 %v4542_v2, %v1114_v63  ;;  %3316 = vrot.lane.b32.xlu1 %v2452_v37, %s3987_s13  ;;  %3442 = vrot.lane.b32.xlu0 %v2320_v26, %s3991_s24  ;;  %v1949_v56 = vrot.slane %v4683_v29, %v4144_v19 }
 0x191   : > { %v4779_v2 = vrot.slane %v4661_v0, %v4345_v49  ;;  %v1669_v60 = vrot.slane %v1655_v46, %v4345_v49  ;;  %v4786_v26 = vrot.slane %v1654_v15, %v4144_v19  ;;  %v2522_v0 = vcombine.low %v4771_v23, %v4768_v30 }
 0x192   : > { %v2506_v28 = vcombine.low %v2143_v13, %v2145_v45  ;;  %v2490_v8 = vcombine.low %v2142_v51, %v2144_v57  ;;  %v1969_v25 = vrot.slane %v4749_v48, %v4144_v19  ;;  %v2435_v53 = vcombine.high %v4712_v61, %v4709_v11 }
 0x193   : > { %v1135_v5 = vpop.permute.xlu1 %1134  ;;  %v1128_v20 = vpop.permute.xlu0 %1127  ;;  %v2507_v3 = vcombine.high %v2143_v13, %v2145_v45  ;;  %v2491_v15 = vcombine.high %v2142_v51, %v2144_v57  ;;  %v2403_v43 = vcombine.high %v4732_v34, %v4729_v42  ;;  %v2459_v11 = vcombine.high %v4723_v58, %v4702_v1 }
 0x194   : > { %v2514_v63 = vrot.slane %v2506_v28, %v4394_v22  ;;  %v2498_v37 = vrot.slane %v2490_v8, %v4394_v22  ;;  %3348 = vrot.lane.b32.xlu1 %v2453_v39, %s3988_s14  ;;  %3474 = vrot.lane.b32.xlu0 %v2321_v6, %s3992_s26  ;;  %v2454_v28 = vcombine.low %v2410_v12, %v2442_v54 }
 0x195   : > { %v1671_v39 = vcombine.high %v1669_v60, %v1669_v60  ;;  %v2475_v6 = vcombine.high %v4718_v24, %v4699_v18  ;;  %v2523_v13 = vcombine.high %v4771_v23, %v4768_v30  ;;  %v4821_v18 = vrot.slane %v2522_v0, %v4397_v38 }
 0x196   : > { %v2554_v17 = vcombine.low %v2498_v37, %v2514_v63  ;;  %v2555_v46 = vcombine.high %v2498_v37, %v2514_v63  ;;  %v4824_v1 = vrot.slane %v2507_v3, %v4394_v22  ;;  %v4827_v24 = vrot.slane %v2491_v15, %v4394_v22 }
 0x197   : > { %v1149_v14 = vpop.permute.xlu1 %1148  ;;  %v1142_v27 = vpop.permute.xlu0 %1141  ;;  %v2455_v58 = vcombine.high %v2410_v12, %v2442_v54  ;;  %v2449_v42 = vrot.slane %v2435_v53, %v4397_v38  ;;  %v4844_v54 = vld [vmem:[%s4342_s11 + $0x30] sm:$0xff]  ;;  %v4847_v0 = vrot.slane %v2475_v6, %v4394_v22  ;;  %v2537_v53 = vrot.slane %v2523_v13, %v4397_v38 }
 0x198   : > { %v4809_v61 = vrot.slane %v2554_v17, %v4397_v38  ;;  %v4814_v51 = vadd.f32 %v4552_v36, %v1149_v14  ;;  %v4817_v45 = vadd.f32 %v4555_v9, %v1142_v27  ;;  %3380 = vrot.lane.b32.xlu1 %v2454_v28, %s3989_s21  ;;  %v5513_v36 = vrot.slane %v4520_v50, %v4144_v19 }
 0x199   : > { %v5514_v9 = vrot.slane %v4523_v31, %v4144_v19  ;;  %v2569_v37 = vrot.slane %v2555_v46, %v4397_v38  ;;  %v4850_v50 = vrot.slane %v2459_v11, %v4394_v22  ;;  %v1702_v31 = vcombine.high %v4749_v48, %v4749_v48 }
 0x19a   : > { %v4833_v34 = vadd.f32 %v5513_v36, %v1135_v5  ;;  %v2587_v63 = vcombine.high %v4821_v18, %v4809_v61  ;;  %v2417_v5 = vrot.slane %v2403_v43, %v4397_v38  ;;  %v1700_v3 = vcombine.high %v4779_v2, %v4779_v2 }
 0x19b   : > { %v4838_v57 = vadd.f32 %v5514_v9, %v1128_v20  ;;  %v1163_v30 = vpop.permute.xlu1 %1162  ;;  %v1156_v23 = vpop.permute.xlu0 %1155  ;;  %v4865_v15 = vrot.slane %v1671_v39, %v4345_v49  ;;  %v4868_v17 = vrot.slane %v1669_v60, %v4345_v49  ;;  %v4872_v46 = vrot.slane %v4844_v54, %v4345_v49 }
 0x19c   : > { %v2610_v20 = vcombine.low %v4833_v34, %v4814_v51  ;;  %3412 = vrot.lane.b32.xlu1 %v2455_v58, %s3990_s22  ;;  %3286 = vrot.lane.b32.xlu0 %v2587_v63, %s3986_s12  ;;  %v2570_v14 = vcombine.low %v4827_v24, %v4824_v1  ;;  %v2456_v43 = vcombine.low %v2417_v5, %v2449_v42 }
 0x19d   : > { %v2594_v12 = vcombine.low %v4838_v57, %v4817_v45  ;;  %v2588_v6 = vcombine.low %v2537_v53, %v2569_v37  ;;  %v5515_v39 = vrot.slane %v4549_v32, %v4144_v19  ;;  %v5516_v60 = vrot.slane %v4558_v62, %v4144_v19 }
 0x19e   : > { %v2538_v63 = vcombine.low %v4850_v50, %v4847_v0  ;;  %v2618_v4 = vrot.slane %v2610_v20, %v4394_v22  ;;  %v4893_v62 = vrot.slane %v1702_v31, %v4144_v19  ;;  %v2578_v20 = vrot.slane %v2570_v14, %v4397_v38 }
 0x19f   : > { %v1177_v27 = vpop.permute.xlu1 %1176  ;;  %v1170_v28 = vpop.permute.xlu0 %1169  ;;  %v2151_v13 = vadd.f32 %v5515_v39, %v1163_v30  ;;  %v2150_v58 = vadd.f32 %v5516_v60, %v1156_v23  ;;  %v2602_v8 = vrot.slane %v2594_v12, %v4394_v22  ;;  %v1719_v12 = vcombine.high %v4872_v46, %v4872_v46 }
 0x1a0   : > { %v2153_v36 = vadd.f32 %v4651_v33, %v1177_v27  ;;  %v2152_v9 = vadd.f32 %v4654_v7, %v1170_v28  ;;  %3444 = vrot.lane.b32.xlu1 %v2456_v43, %s3991_s24  ;;  %3318 = vrot.lane.b32.xlu0 %v2588_v6, %s3987_s13  ;;  %v4896_v33 = vrot.slane %v1700_v3, %v4144_v19 }
 0x1a1   : > { %v2457_v27 = vcombine.high %v2417_v5, %v2449_v42  ;;  %v2589_v28 = vcombine.high %v2537_v53, %v2569_v37  ;;  %v2658_v39 = vcombine.low %v2602_v8, %v2618_v4  ;;  %v2546_v42 = vrot.slane %v2538_v63, %v4397_v38 }
 0x1a2   : > { %v2642_v32 = vcombine.low %v2151_v13, %v2153_v36  ;;  %v2626_v30 = vcombine.low %v2150_v58, %v2152_v9  ;;  %v1703_v37 = vcombine.high %v4865_v15, %v4865_v15  ;;  %v2571_v5 = vcombine.high %v4827_v24, %v4824_v1 }
 0x1a3   : > { %v1191_v7 = vpop.permute.xlu1 %1190  ;;  %v1184_v23 = vpop.permute.xlu0 %1183  ;;  %v2643_v53 = vcombine.high %v2151_v13, %v2153_v36  ;;  %v2627_v14 = vcombine.high %v2150_v58, %v2152_v9  ;;  %v2590_v3 = vcombine.low %v2546_v42, %v2578_v20  ;;  %v2539_v63 = vcombine.high %v4850_v50, %v4847_v0 }
 0x1a4   : > { %v2650_v43 = vrot.slane %v2642_v32, %v4394_v22  ;;  %v2634_v6 = vrot.slane %v2626_v30, %v4394_v22  ;;  %3476 = vrot.lane.b32.xlu1 %v2457_v27, %s3992_s26  ;;  %3350 = vrot.lane.b32.xlu0 %v2589_v28, %s3988_s14  ;;  %v1701_v27 = vcombine.high %v4868_v17, %v4868_v17 }
 0x1a5   : > { %v4917_v28 = vrot.slane %v1719_v12, %v4345_v49  ;;  %v2611_v31 = vcombine.high %v4833_v34, %v4814_v51  ;;  %v2595_v1 = vcombine.high %v4838_v57, %v4817_v45  ;;  %v2659_v13 = vcombine.high %v2602_v8, %v2618_v4 }
 0x1a6   : > { %v2690_v60 = vcombine.low %v2634_v6, %v2650_v43  ;;  %v2691_v32 = vcombine.high %v2634_v6, %v2650_v43  ;;  %v4936_v0 = vrot.slane %v2658_v39, %v4397_v38  ;;  %v4939_v51 = vrot.slane %v2643_v53, %v4394_v22 }
 0x1a7   : > { %v1205_v30 = vpop.permute.xlu1 %1204  ;;  %v1198_v11 = vpop.permute.xlu0 %1197  ;;  %v4942_v45 = vrot.slane %v2627_v14, %v4394_v22  ;;  %v2591_v34 = vcombine.high %v2546_v42, %v2578_v20  ;;  %v2585_v4 = vrot.slane %v2571_v5, %v4397_v38  ;;  %v4959_v20 = vrot.slane %v2611_v31, %v4394_v22 }
 0x1a8   : > { %v4926_v24 = vrot.slane %v2690_v60, %v4397_v38  ;;  %v4929_v58 = vadd.f32 %v4668_v40, %v1205_v30  ;;  %v4932_v36 = vadd.f32 %v4675_v35, %v1198_v11  ;;  %3382 = vrot.lane.b32.xlu0 %v2590_v3, %s3989_s21  ;;  %v5517_v40 = vrot.slane %v4600_v55, %v4144_v19 }
 0x1a9   : > { %v5518_v35 = vrot.slane %v4603_v44, %v4144_v19  ;;  %v2705_v12 = vrot.slane %v2691_v32, %v4397_v38  ;;  %v4962_v43 = vrot.slane %v2595_v1, %v4394_v22  ;;  %v2553_v55 = vrot.slane %v2539_v63, %v4397_v38 }
 0x1aa   : > { %v4948_v8 = vadd.f32 %v5517_v40, %v1191_v7  ;;  %v2723_v9 = vcombine.high %v4936_v0, %v4926_v24  ;;  %v4967_v44 = vrot.slane %v4872_v46, %v4345_v49  ;;  %v2673_v6 = vrot.slane %v2659_v13, %v4397_v38 }
 0x1ab   : > { %v4953_v57 = vadd.f32 %v5518_v35, %v1184_v23  ;;  %v1219_v50 = vpop.permute.xlu1 %1218  ;;  %v1212_v11 = vpop.permute.xlu0 %1211  ;;  %v4977_v31 = vrot.slane %v1703_v37, %v4144_v19  ;;  %v1751_v3 = vcombine.high %v4917_v28, %v4917_v28  ;;  %v1704_v39 = vcombine.high %v4844_v54, %v4844_v54 }
 0x1ac   : > { %v2746_v7 = vcombine.low %v4948_v8, %v4929_v58  ;;  %3288 = vrot.lane.b32.xlu1 %v2723_v9, %s3986_s12  ;;  %3414 = vrot.lane.b32.xlu0 %v2591_v34, %s3990_s22  ;;  %v1749_v46 = vcombine.high %v4967_v44, %v4967_v44  ;;  %v2706_v42 = vcombine.low %v4942_v45, %v4939_v51 }
 0x1ad   : > { %v2730_v23 = vcombine.low %v4953_v57, %v4932_v36  ;;  %v2724_v14 = vcombine.low %v2673_v6, %v2705_v12  ;;  %v2592_v60 = vcombine.low %v2553_v55, %v2585_v4  ;;  %v2722_v37 = vcombine.low %v4936_v0, %v4926_v24 }
 0x1ae   : > { %v2159_v32 = vadd.f32 %v1953_v10, %v1219_v50  ;;  %v2158_v30 = vadd.f32 %v1949_v56, %v1212_v11  ;;  %v2674_v1 = vcombine.low %v4962_v43, %v4959_v20  ;;  %v2754_v13 = vrot.slane %v2746_v7, %v4394_v22 }
 0x1af   : > { %v1233_v5 = vpop.permute.xlu1 %1232  ;;  %v1226_v53 = vpop.permute.xlu0 %1225  ;;  %v2738_v34 = vrot.slane %v2730_v23, %v4394_v22  ;;  %v5004_v29 = vrot.slane %v1701_v27, %v4144_v19  ;;  %v2001_v56 = vrot.slane %v4917_v28, %v4144_v19  ;;  %v2725_v40 = vcombine.high %v2673_v6, %v2705_v12 }
 0x1b0   : > { %v2161_v54 = vadd.f32 %v4786_v26, %v1233_v5  ;;  %v2160_v63 = vadd.f32 %v4789_v21, %v1226_v53  ;;  %3320 = vrot.lane.b32.xlu1 %v2724_v14, %s3987_s13  ;;  %3446 = vrot.lane.b32.xlu0 %v2592_v60, %s3991_s24  ;;  %v2593_v35 = vcombine.high %v2553_v55, %v2585_v4  ;;  %v5018_v5 = vld [vmem:[%s4342_s11 + $0x38] sm:$0xff] }
 0x1b1   : > { %v2714_v50 = vrot.slane %v2706_v42, %v4397_v38  ;;  %v1718_v11 = vrot.slane %v1704_v39, %v4345_v49  ;;  %v1997_v23 = vrot.slane %v4967_v44, %v4144_v19  ;;  %v5015_v27 = vrot.slane %v1751_v3, %v4144_v19 }
 0x1b2   : > { %v2778_v52 = vcombine.low %v2159_v32, %v2161_v54  ;;  %v2762_v10 = vcombine.low %v2158_v30, %v2160_v63  ;;  %v2794_v53 = vcombine.low %v2738_v34, %v2754_v13  ;;  %v2682_v4 = vrot.slane %v2674_v1, %v4397_v38 }
 0x1b3   : > { %v1247_v26 = vpop.permute.xlu1 %1246  ;;  %v1240_v21 = vpop.permute.xlu0 %1239  ;;  %v5024_v12 = vrot.slane %v1749_v46, %v4144_v19  ;;  %v2707_v55 = vcombine.high %v4942_v45, %v4939_v51  ;;  %v2779_v6 = vcombine.high %v2159_v32, %v2161_v54  ;;  %v2763_v39 = vcombine.high %v2158_v30, %v2160_v63 }
 0x1b4   : > { %v2786_v9 = vrot.slane %v2778_v52, %v4394_v22  ;;  %v2770_v7 = vrot.slane %v2762_v10, %v4394_v22  ;;  %3352 = vrot.lane.b32.xlu1 %v2725_v40, %s3988_s14  ;;  %3478 = vrot.lane.b32.xlu0 %v2593_v35, %s3992_s26  ;;  %v2726_v52 = vcombine.low %v2682_v4, %v2714_v50 }
 0x1b5   : > { %v1720_v10 = vcombine.high %v1718_v11, %v1718_v11  ;;  %v5030_v40 = vrot.slane %v5018_v5, %v4345_v49  ;;  %v2675_v1 = vcombine.high %v4962_v43, %v4959_v20  ;;  %v2747_v46 = vcombine.high %v4948_v8, %v4929_v58 }
 0x1b6   : > { %v2826_v42 = vcombine.low %v2770_v7, %v2786_v9  ;;  %v2827_v3 = vcombine.high %v2770_v7, %v2786_v9  ;;  %v2731_v51 = vcombine.high %v4953_v57, %v4932_v36  ;;  %v2795_v45 = vcombine.high %v2738_v34, %v2754_v13 }
 0x1b7   : > { %v1261_v14 = vpop.permute.xlu1 %1260  ;;  %v1254_v60 = vpop.permute.xlu0 %1253  ;;  %v5046_v54 = vrot.slane %v2794_v53, %v4397_v38  ;;  %v5052_v58 = vrot.slane %v2779_v6, %v4394_v22  ;;  %v5055_v36 = vrot.slane %v2763_v39, %v4394_v22  ;;  %v2727_v8 = vcombine.high %v2682_v4, %v2714_v50 }
 0x1b8   : > { %v5039_v32 = vadd.f32 %v4893_v62, %v1261_v14  ;;  %v5042_v30 = vadd.f32 %v4896_v33, %v1254_v60  ;;  %3384 = vrot.lane.b32.xlu1 %v2726_v52, %s3989_s21  ;;  %v5049_v20 = vrot.slane %v2826_v42, %v4397_v38  ;;  %v2721_v62 = vrot.slane %v2707_v55, %v4397_v38 }
 0x1b9   : > { %v5061_v33 = vadd.f32 %v1969_v25, %v1247_v26  ;;  %v5519_v57 = vrot.slane %v4779_v2, %v4144_v19  ;;  %v2841_v35 = vrot.slane %v2827_v3, %v4397_v38  ;;  %v5072_v50 = vrot.slane %v2747_v46, %v4394_v22 }
 0x1ba   : > { %v2859_v34 = vcombine.high %v5046_v54, %v5049_v20  ;;  %v5075_v9 = vrot.slane %v2731_v51, %v4394_v22  ;;  %v2689_v48 = vrot.slane %v2675_v1, %v4397_v38  ;;  %v5079_v25 = vrot.slane %v1720_v10, %v4345_v49 }
 0x1bb   : > { %v5066_v43 = vadd.f32 %v5519_v57, %v1240_v21  ;;  %v1275_v63 = vpop.permute.xlu1 %1274  ;;  %v1268_v13 = vpop.permute.xlu0 %1267  ;;  %v2882_v2 = vcombine.low %v5061_v33, %v5039_v32  ;;  %v2809_v21 = vrot.slane %v2795_v45, %v4397_v38  ;;  %v5089_v7 = vrot.slane %v1718_v11, %v4345_v49 }
 0x1bc   : > { %3416 = vrot.lane.b32.xlu1 %v2727_v8, %s3990_s22  ;;  %3290 = vrot.lane.b32.xlu0 %v2859_v34, %s3986_s12  ;;  %v1752_v53 = vcombine.high %v5079_v25, %v5079_v25  ;;  %v1768_v4 = vcombine.high %v5030_v40, %v5030_v40  ;;  %v1753_v55 = vcombine.high %v5018_v5, %v5018_v5 }
 0x1bd   : > { %v2866_v26 = vcombine.low %v5066_v43, %v5042_v30  ;;  %v2842_v6 = vcombine.low %v5055_v36, %v5052_v58  ;;  %v2728_v3 = vcombine.low %v2689_v48, %v2721_v62  ;;  %v2860_v14 = vcombine.low %v2809_v21, %v2841_v35 }
 0x1be   : > { %v2858_v11 = vcombine.low %v5046_v54, %v5049_v20  ;;  %v5520_v60 = vrot.slane %v4865_v15, %v4144_v19  ;;  %v5521_v10 = vrot.slane %v4868_v17, %v4144_v19  ;;  %v2810_v51 = vcombine.low %v5075_v9, %v5072_v50 }
 0x1bf   : > { %v1289_v39 = vpop.permute.xlu1 %1288  ;;  %v1282_v42 = vpop.permute.xlu0 %1281  ;;  %v2890_v45 = vrot.slane %v2882_v2, %v4394_v22  ;;  %v2874_v8 = vrot.slane %v2866_v26, %v4394_v22  ;;  %v2017_v17 = vrot.slane %v5079_v25, %v4144_v19  ;;  %v2729_v34 = vcombine.high %v2689_v48, %v2721_v62 }
 0x1c0   : > { %v2167_v52 = vadd.f32 %v5520_v60, %v1275_v63  ;;  %v2166_v1 = vadd.f32 %v5521_v10, %v1268_v13  ;;  %v2169_v5 = vadd.f32 %v4977_v31, %v1289_v39  ;;  %v2168_v46 = vadd.f32 %v5004_v29, %v1282_v42  ;;  %3448 = vrot.lane.b32.xlu1 %v2728_v3, %s3991_s24 }
 0x1c1   : > { %3322 = vrot.lane.b32.xlu0 %v2860_v14, %s3987_s13  ;;  %v5118_v31 = vrot.slane %v1753_v55, %v4345_v49  ;;  %v2850_v29 = vrot.slane %v2842_v6, %v4397_v38  ;;  %v2861_v2 = vcombine.high %v2809_v21, %v2841_v35  ;;  %v2013_v26 = vrot.slane %v5089_v7, %v4144_v19 }
 0x1c2   : > { %v2914_v15 = vcombine.low %v2167_v52, %v2169_v5  ;;  %v2898_v57 = vcombine.low %v2166_v1, %v2168_v46  ;;  %v2025_v3 = vrot.slane %v1752_v53, %v4144_v19  ;;  %v1750_v14 = vcombine.high %v5089_v7, %v5089_v7 }
 0x1c3   : > { %v1303_v63 = vpop.permute.xlu1 %1302  ;;  %v1296_v13 = vpop.permute.xlu0 %1295  ;;  %v2818_v55 = vrot.slane %v2810_v51, %v4397_v38  ;;  %v2930_v60 = vcombine.low %v2874_v8, %v2890_v45  ;;  %v5132_v62 = vrot.slane %v1768_v4, %v4345_v49  ;;  %v2843_v35 = vcombine.high %v5055_v36, %v5052_v58 }
 0x1c4   : > { %v2922_v39 = vrot.slane %v2914_v15, %v4394_v22  ;;  %v2906_v42 = vrot.slane %v2898_v57, %v4394_v22  ;;  %3480 = vrot.lane.b32.xlu1 %v2729_v34, %s3992_s26  ;;  %v5138_v21 = vrot.slane %v5030_v40, %v4345_v49  ;;  %v1769_v7 = vcombine.high %v5118_v31, %v5118_v31 }
 0x1c5   : > { %3354 = vrot.lane.b32.xlu0 %v2861_v2, %s3988_s14  ;;  %v2915_v53 = vcombine.high %v2167_v52, %v2169_v5  ;;  %v2899_v6 = vcombine.high %v2166_v1, %v2168_v46  ;;  %v2862_v57 = vcombine.low %v2818_v55, %v2850_v29  ;;  %v2883_v4 = vcombine.high %v5061_v33, %v5039_v32 }
 0x1c6   : > { %v2962_v48 = vcombine.low %v2906_v42, %v2922_v39  ;;  %v2963_v10 = vcombine.high %v2906_v42, %v2922_v39  ;;  %v2867_v58 = vcombine.high %v5066_v43, %v5042_v30  ;;  %v2811_v52 = vcombine.high %v5075_v9, %v5072_v50 }
 0x1c7   : > { %v1317_v51 = vpop.permute.xlu1 %1316  ;;  %v1310_v15 = vpop.permute.xlu0 %1309  ;;  %v2931_v1 = vcombine.high %v2874_v8, %v2890_v45  ;;  %v5156_v5 = vrot.slane %v2930_v60, %v4397_v38  ;;  %v2857_v30 = vrot.slane %v2843_v35, %v4397_v38  ;;  %v2863_v33 = vcombine.high %v2818_v55, %v2850_v29 }
 0x1c8   : > { %v5147_v36 = vadd.f32 %v5015_v27, %v1317_v51  ;;  %v5150_v40 = vadd.f32 %v5024_v12, %v1310_v15  ;;  %v5159_v32 = vrot.slane %v2962_v48, %v4397_v38  ;;  %v5165_v27 = vadd.f32 %v2001_v56, %v1303_v63 }
 0x1c9   : > { %3386 = vrot.lane.b32.xlu0 %v2862_v57, %s3989_s21  ;;  %v5170_v12 = vadd.f32 %v1997_v23, %v1296_v13  ;;  %v5173_v43 = vrot.slane %v2915_v53, %v4394_v22  ;;  %v5176_v50 = vrot.slane %v2899_v6, %v4394_v22  ;;  %v2977_v28 = vrot.slane %v2963_v10, %v4397_v38 }
 0x1ca   : > { %v2995_v45 = vcombine.high %v5156_v5, %v5159_v32  ;;  %v5182_v56 = vrot.slane %v2883_v4, %v4394_v22  ;;  %v5185_v44 = vrot.slane %v2867_v58, %v4394_v22  ;;  %v3018_v23 = vcombine.low %v5165_v27, %v5147_v36 }
 0x1cb   : > { %v1331_v9 = vpop.permute.xlu1 %1330  ;;  %v1324_v46 = vpop.permute.xlu0 %1323  ;;  %v3002_v8 = vcombine.low %v5170_v12, %v5150_v40  ;;  %v2825_v29 = vrot.slane %v2811_v52, %v4397_v38  ;;  %v2021_v63 = vrot.slane %v1750_v14, %v4144_v19  ;;  %v2945_v13 = vrot.slane %v2931_v1, %v4397_v38 }
 0x1cc   : > { %3292 = vrot.lane.b32.xlu1 %v2995_v45, %s3986_s12  ;;  %v1800_v34 = vcombine.high %v5132_v62, %v5132_v62  ;;  %v1798_v2 = vcombine.high %v5138_v21, %v5138_v21  ;;  %v5201_v39 = vrot.slane %v1769_v7, %v4345_v49  ;;  %v2978_v42 = vcombine.low %v5176_v50, %v5173_v43 }
 0x1cd   : > { %3418 = vrot.lane.b32.xlu0 %v2863_v33, %s3990_s22  ;;  %v2996_v35 = vcombine.low %v2945_v13, %v2977_v28  ;;  %v2864_v48 = vcombine.low %v2825_v29, %v2857_v30  ;;  %v2994_v14 = vcombine.low %v5156_v5, %v5159_v32  ;;  %v2946_v53 = vcombine.low %v5185_v44, %v5182_v56 }
 0x1ce   : > { %v3026_v6 = vrot.slane %v3018_v23, %v4394_v22  ;;  %v3010_v10 = vrot.slane %v3002_v8, %v4394_v22  ;;  %v2175_v7 = vadd.f32 %v2017_v17, %v1331_v9  ;;  %v2174_v51 = vadd.f32 %v2013_v26, %v1324_v46 }
 0x1cf   : > { %v1345_v55 = vpop.permute.xlu1 %1344  ;;  %v1338_v60 = vpop.permute.xlu0 %1337  ;;  %v2033_v4 = vrot.slane %v5132_v62, %v4144_v19  ;;  %v5220_v58 = vrot.slane %v5118_v31, %v4345_v49  ;;  %v1801_v52 = vcombine.high %v5201_v39, %v5201_v39  ;;  %v2986_v25 = vrot.slane %v2978_v42, %v4397_v38 }
 0x1d0   : > { %v2177_v15 = vadd.f32 %v2025_v3, %v1345_v55  ;;  %v2176_v57 = vadd.f32 %v2021_v63, %v1338_v60  ;;  %3324 = vrot.lane.b32.xlu1 %v2996_v35, %s3987_s13  ;;  %v2997_v33 = vcombine.high %v2945_v13, %v2977_v28  ;;  %v2029_v9 = vrot.slane %v5138_v21, %v4144_v19 }
 0x1d1   : > { %3450 = vrot.lane.b32.xlu0 %v2864_v48, %s3991_s24  ;;  %v2865_v46 = vcombine.high %v2825_v29, %v2857_v30  ;;  %v2041_v62 = vrot.slane %v1800_v34, %v4144_v19  ;;  %v2037_v45 = vrot.slane %v1798_v2, %v4144_v19  ;;  %v2954_v49 = vrot.slane %v2946_v53, %v4397_v38 }
 0x1d2   : > { %v3050_v17 = vcombine.low %v2175_v7, %v2177_v15  ;;  %v3034_v26 = vcombine.low %v2174_v51, %v2176_v57  ;;  %v3066_v31 = vcombine.low %v3010_v10, %v3026_v6  ;;  %v2049_v28 = vrot.slane %v5201_v39, %v4144_v19 }
 0x1d3   : > { %v1359_v3 = vpop.permute.xlu1 %1358  ;;  %v1352_v1 = vpop.permute.xlu0 %1351  ;;  %v2045_v21 = vrot.slane %v5220_v58, %v4144_v19  ;;  %v2057_v30 = vrot.slane %v1801_v52, %v4144_v19  ;;  %v1799_v29 = vcombine.high %v5220_v58, %v5220_v58  ;;  %v2979_v63 = vcombine.high %v5176_v50, %v5173_v43 }
 0x1d4   : > { %v3058_v23 = vrot.slane %v3050_v17, %v4394_v22  ;;  %v3042_v8 = vrot.slane %v3034_v26, %v4394_v22  ;;  %3356 = vrot.lane.b32.xlu1 %v2997_v33, %s3988_s14  ;;  %v2998_v55 = vcombine.low %v2954_v49, %v2986_v25  ;;  %v3051_v60 = vcombine.high %v2175_v7, %v2177_v15 }
 0x1d5   : > { %3482 = vrot.lane.b32.xlu0 %v2865_v46, %s3992_s26  ;;  %v3035_v35 = vcombine.high %v2174_v51, %v2176_v57  ;;  %v2947_v53 = vcombine.high %v5185_v44, %v5182_v56  ;;  %v3067_v52 = vcombine.high %v3010_v10, %v3026_v6  ;;  %v5250_v58 = vrot.slane %v3066_v31, %v4397_v38 }
 0x1d6   : > { %v3098_v13 = vcombine.low %v3042_v8, %v3058_v23  ;;  %v3099_v34 = vcombine.high %v3042_v8, %v3058_v23  ;;  %v3019_v50 = vcombine.high %v5165_v27, %v5147_v36  ;;  %v3003_v7 = vcombine.high %v5170_v12, %v5150_v40 }
 0x1d7   : > { %v1373_v2 = vpop.permute.xlu1 %1372  ;;  %v1366_v42 = vpop.permute.xlu0 %1365  ;;  %v5260_v51 = vadd.f32 %v2033_v4, %v1359_v3  ;;  %v5262_v15 = vadd.f32 %v2029_v9, %v1352_v1  ;;  %v2993_v56 = vrot.slane %v2979_v63, %v4397_v38  ;;  %v2999_v57 = vcombine.high %v2954_v49, %v2986_v25 }
 0x1d8   : > { %v5243_v48 = vadd.f32 %v2041_v62, %v1373_v2  ;;  %v5245_v39 = vadd.f32 %v2037_v45, %v1366_v42  ;;  %v5253_v43 = vrot.slane %v3098_v13, %v4397_v38  ;;  %3388 = vrot.lane.b32.xlu1 %v2998_v55, %s3989_s21  ;;  %v3113_v44 = vrot.slane %v3099_v34, %v4397_v38 }
 0x1d9   : > { %v3065_v26 = vrot.slane %v3051_v60, %v4394_v22  ;;  %v3049_v36 = vrot.slane %v3035_v35, %v4394_v22  ;;  %v2961_v12 = vrot.slane %v2947_v53, %v4397_v38  ;;  %v3081_v4 = vrot.slane %v3067_v52, %v4397_v38 }
 0x1da   : > { %v3131_v17 = vcombine.high %v5250_v58, %v5253_v43  ;;  %v3154_v40 = vcombine.low %v5260_v51, %v5243_v48  ;;  %v3138_v27 = vcombine.low %v5262_v15, %v5245_v39  ;;  %v2053_v25 = vrot.slane %v1799_v29, %v4144_v19 }
 0x1db   : > { %v1387_v6 = vpop.permute.xlu1 %1386  ;;  %v1380_v10 = vpop.permute.xlu0 %1379  ;;  %v3033_v3 = vrot.slane %v3019_v50, %v4394_v22  ;;  %v3017_v1 = vrot.slane %v3003_v7, %v4394_v22  ;;  %v3000_v46 = vcombine.low %v2961_v12, %v2993_v56  ;;  %v3132_v62 = vcombine.low %v3081_v4, %v3113_v44 }
 0x1dc   : > { %3420 = vrot.lane.b32.xlu1 %v2999_v57, %s3990_s22  ;;  %3294 = vrot.lane.b32.xlu0 %v3131_v17, %s3986_s12  ;;  %v3130_v45 = vcombine.low %v5250_v58, %v5253_v43  ;;  %v3114_v49 = vcombine.low %v3049_v36, %v3065_v26  ;;  %v3162_v31 = vrot.slane %v3154_v40, %v4394_v22 }
 0x1dd   : > { %v3146_v23 = vrot.slane %v3138_v27, %v4394_v22  ;;  %v2183_v8 = vadd.f32 %v2049_v28, %v1387_v6  ;;  %v2182_v63 = vadd.f32 %v2045_v21, %v1380_v10  ;;  %v3082_v29 = vcombine.low %v3017_v1, %v3033_v3 }
 0x1de   : > { %v3001_v42 = vcombine.high %v2961_v12, %v2993_v56  ;;  %v3122_v55 = vrot.slane %v3114_v49, %v4397_v38  ;;  %v3133_v60 = vcombine.high %v3081_v4, %v3113_v44  ;;  %v3115_v6 = vcombine.high %v3049_v36, %v3065_v26 }
 0x1df   : > { %v1401_v33 = vpop.permute.xlu1 %1400  ;;  %v1394_v9 = vpop.permute.xlu0 %1393  ;;  %v3202_v35 = vcombine.low %v3146_v23, %v3162_v31  ;;  %v3090_v28 = vrot.slane %v3082_v29, %v4397_v38  ;;  %v3155_v56 = vcombine.high %v5260_v51, %v5243_v48  ;;  %v3139_v10 = vcombine.high %v5262_v15, %v5245_v39 }
 0x1e0   : > { %v2185_v13 = vadd.f32 %v2057_v30, %v1401_v33  ;;  %v2184_v19 = vadd.f32 %v2053_v25, %v1394_v9  ;;  %3452 = vrot.lane.b32.xlu1 %v3000_v46, %s3991_s24  ;;  %3326 = vrot.lane.b32.xlu0 %v3132_v62, %s3987_s13  ;;  %v3203_v57 = vcombine.high %v3146_v23, %v3162_v31 }
 0x1e1   : > { %v3134_v44 = vcombine.low %v3090_v28, %v3122_v55  ;;  %v5298_v17 = vrot.slane %v3202_v35, %v4397_v38  ;;  %v3083_v27 = vcombine.high %v3017_v1, %v3033_v3  ;;  %v3129_v39 = vrot.slane %v3115_v6, %v4397_v38 }
 0x1e2   : > { %v3186_v34 = vcombine.low %v2183_v8, %v2185_v13  ;;  %v3170_v2 = vcombine.low %v2182_v63, %v2184_v19  ;;  %v3187_v21 = vcombine.high %v2183_v8, %v2185_v13  ;;  %v3171_v30 = vcombine.high %v2182_v63, %v2184_v19 }
 0x1e3   : > { %v3135_v15 = vcombine.high %v3090_v28, %v3122_v55  ;;  %v3169_v4 = vrot.slane %v3155_v56, %v4394_v22  ;;  %v3153_v25 = vrot.slane %v3139_v10, %v4394_v22  ;;  %v3217_v3 = vrot.slane %v3203_v57, %v4397_v38  ;;  %v3560_v56 = vld [vmem:[%s5339_s6] sm:$0xff] }
 0x1e4   : > { %v3194_v53 = vrot.slane %v3186_v34, %v4394_v22  ;;  %v3178_v52 = vrot.slane %v3170_v2, %v4394_v22  ;;  %3484 = vrot.lane.b32.xlu1 %v3001_v42, %s3992_s26  ;;  %3358 = vrot.lane.b32.xlu0 %v3133_v60, %s3988_s14  ;;  %v3201_v12 = vrot.slane %v3187_v21, %v4394_v22 }
 0x1e5   : > { %v3185_v26 = vrot.slane %v3171_v30, %v4394_v22  ;;  %v3097_v1 = vrot.slane %v3083_v27, %v4397_v38  ;;  %v3218_v49 = vcombine.low %v3153_v25, %v3169_v4  ;;  %v3219_v34 = vcombine.high %v3153_v25, %v3169_v4 }
 0x1e6   : > { %v3234_v50 = vcombine.low %v3178_v52, %v3194_v53  ;;  %v3235_v7 = vcombine.high %v3178_v52, %v3194_v53  ;;  %v5522_v28 = vcombine.low %v4572_v47, %v4563_v41 }
 0x1e7   : > { %v3250_v33 = vcombine.low %v3185_v26, %v3201_v12  ;;  %v3136_v62 = vcombine.low %v3097_v1, %v3129_v39  ;;  %v3137_v8 = vcombine.high %v3097_v1, %v3129_v39  ;;  %v3226_v63 = vrot.slane %v3218_v49, %v4397_v38 }
 0x1e8   : > { %v5301_v40 = vrot.slane %v3234_v50, %v4397_v38  ;;  %3390 = vrot.lane.b32.xlu0 %v3134_v44, %s3989_s21  ;;  %v3249_v48 = vrot.slane %v3235_v7, %v4397_v38  ;;  %v3251_v13 = vcombine.high %v3185_v26, %v3201_v12  ;;  %v3233_v60 = vrot.slane %v3219_v34, %v4397_v38 }
 0x1e9   : > { %v3258_v31 = vrot.slane %v3250_v33, %v4397_v38  ;;  %v5523_v39 = vcombine.low %v4706_v16, %v4694_v59 }
 0x1ea   : > { %v3267_v51 = vcombine.high %v5298_v17, %v5301_v40  ;;  %v3266_v36 = vcombine.low %v5298_v17, %v5301_v40  ;;  %v3268_v46 = vcombine.low %v3217_v3, %v3249_v48  ;;  %v3269_v23 = vcombine.high %v3217_v3, %v3249_v48 }
 0x1eb   : > { %v3270_v29 = vcombine.low %v3226_v63, %v3258_v31  ;;  %v3265_v2 = vrot.slane %v3251_v13, %v4397_v38  ;;  %v3271_v55 = vcombine.high %v3226_v63, %v3258_v31  ;;  %v5524_v63 = vcombine.low %v4821_v18, %v4809_v61 }
 0x1ec   : > { %3296 = vrot.lane.b32.xlu1 %v3267_v51, %s3986_s12  ;;  %3422 = vrot.lane.b32.xlu0 %v3135_v15, %s3990_s22 }
 0x1ed   : > { %v3272_v52 = vcombine.low %v3233_v60, %v3265_v2  ;;  %v3273_v7 = vcombine.high %v3233_v60, %v3265_v2  ;;  %v3562_v60 = vld [vmem:[%s5339_s6 + $0x10] sm:$0xff] }
 0x1ee   : > { %v3283_v9 = vpop.permute.xlu0 %3282 }
 0x1ef   : > { %v3499_v21 = vsel %vm3498_vm2, %v5522_v28, %v3283_v9 }
 0x1f0   : > { %3328 = vrot.lane.b32.xlu1 %v3268_v46, %s3987_s13  ;;  %3454 = vrot.lane.b32.xlu0 %v3136_v62, %s3991_s24  ;;  %v3561_v46 = vld [vmem:[%s5339_s6 + $0x8] sm:$0xff] }
 0x1f2   : > { %v3315_v22 = vpop.permute.xlu0 %3314 }
 0x1f3   : > { %v3508_v38 = vsel %vm3507_vm3, %v3499_v21, %v3315_v22 }
 0x1f4   : > { %3360 = vrot.lane.b32.xlu1 %v3269_v23, %s3988_s14  ;;  %3486 = vrot.lane.b32.xlu0 %v3137_v8, %s3992_s26  ;;  %s5448_s14 = scalar_lea.hbm %s5507_s4, %s3768_s9 }
 0x1f6   : > { %v3347_v19 = vpop.permute.xlu0 %3346 }
 0x1f7   : > { %v3517_v6 = vsel %vm3516_vm4, %v3508_v38, %v3347_v19 }
 0x1f8   : > { %3392 = vrot.lane.b32.xlu1 %v3270_v29, %s3989_s21  ;;  %s3901_s21 = scalar_lea.vmem %s5450_s10, 1024 }
 0x1f9   : > { %p3902_p12 = scmp.ne.s32.totalorder %s5450_s10, %s3901_s21 }
 0x1fa   : > { %v3379_v42 = vpop.permute.xlu0 %3378 }
 0x1fb   : > { %v3525_v41 = vsel %vm345_vm0, %v3517_v6, %v3379_v42  ;;  %p3903_p13 = pnand %p3902_p12, %p4060_p4 }
 0x1fc   : > { %3424 = vrot.lane.b32.xlu1 %v3271_v55, %s3990_s22  ;;  %s3993_s22 = smov [#allocation2]  }
 0x1fd   : > { %p3904_p0 = pneg %p3903_p13 }
 0x1fe   : > { %v3285_v35 = vpop.permute.xlu1 %3284  ;;  %v3411_v53 = vpop.permute.xlu0 %3410 }
 0x1ff   : > { %v3534_v47 = vsel %vm3533_vm5, %v3525_v41, %v3411_v53  ;;  %v3500_v15 = vsel %vm3498_vm2, %v5523_v39, %v3285_v35 }
 0x200   : > { %3456 = vrot.lane.b32.xlu1 %v3272_v52, %s3991_s24  ;;  %s3905_s24 = sshll.u32 %s3993_s22, 4  ;;  %s3906_s24 = int_to_ptr.vmem [resolvable:$false] %s3905_s24 }
 0x201   : > { %p3908_p1 = scmp.lt.s32.totalorder %s5450_s10, %s3906_s24 }
 0x202   : > { %v3317_v30 = vpop.permute.xlu1 %3316  ;;  %v3443_v50 = vpop.permute.xlu0 %3442 }
 0x203   : > { %v3543_v44 = vsel %vm3542_vm6, %v3534_v47, %v3443_v50  ;;  %v3509_v4 = vsel %vm3507_vm3, %v3500_v15, %v3317_v30 }
 0x204   : > { %3488 = vrot.lane.b32.xlu1 %v3273_v7, %s3992_s26  ;;  %s3907_s26 = scalar_lea.vmem %s3906_s24, 2048 }
 0x205   : > { %p3909_p2 = scmp.lt.s32.totalorder %s3907_s26, %s3901_s21 }
 0x206   : > { %v3349_v10 = vpop.permute.xlu1 %3348  ;;  %v3475_v57 = vpop.permute.xlu0 %3474 }
 0x207   : > { %v3552_v27 = vsel %vm3551_vm7, %v3543_v44, %v3475_v57  ;;  %v3518_v1 = vsel %vm3516_vm4, %v3509_v4, %v3349_v10  ;;  %v3563_v44 = vld [vmem:[%s5339_s6 + $0x18] sm:$0xff]  ;;  %p3910_p3 = por %p3909_p2, %p3908_p1 }
 0x208   : > { %v3568_v12 = vadd.f32 %v3560_v56, %v3552_v27 }
 0x209   : > { %p3911_p5 = pnand %p3910_p3, %p3904_p0 }
 0x20a   : > { %3577 = vst.msk [vmem:[%s5350_s8] sm:$0xff] %vm3576_vm8, %v3568_v12  ;;  %v3381_v26 = vpop.permute.xlu1 %3380 }
 0x20b   : > { %v3526_v33 = vsel %vm345_vm0, %v3518_v1, %v3381_v26 }
 0x20e   : > { %v3413_v48 = vpop.permute.xlu1 %3412  ;;  %v3287_v51 = vpop.permute.xlu0 %3286 }
 0x20f   : > { %v3535_v9 = vsel %vm3533_vm5, %v3526_v33, %v3413_v48  ;;  %v3501_v13 = vsel %vm3498_vm2, %v5524_v63, %v3287_v51  ;;  %v3564_v33 = vld [vmem:[%s5339_s6 + $0x20] sm:$0xff] }
 0x212   : > { %v3445_v25 = vpop.permute.xlu1 %3444  ;;  %v3319_v3 = vpop.permute.xlu0 %3318 }
 0x213   : > { %v3544_v62 = vsel %vm3542_vm6, %v3535_v9, %v3445_v25  ;;  %v3510_v19 = vsel %vm3507_vm3, %v3501_v13, %v3319_v3  ;;  %v3565_v13 = vld [vmem:[%s5339_s6 + $0x28] sm:$0xff] }
 0x216   : > { %v3477_v49 = vpop.permute.xlu1 %3476  ;;  %v3351_v31 = vpop.permute.xlu0 %3350 }
 0x217   : > { %v3553_v59 = vsel %vm3551_vm7, %v3544_v62, %v3477_v49  ;;  %v3519_v2 = vsel %vm3516_vm4, %v3510_v19, %v3351_v31 }
 0x218   : > { %v3569_v16 = vadd.f32 %v3561_v46, %v3553_v59 }
 0x21a   : > { %3578 = vst.msk [vmem:[%s5350_s8 + $0x8] sm:$0xff] %vm3576_vm8, %v3569_v16  ;;  %v3383_v22 = vpop.permute.xlu0 %3382 }
 0x21b   : > { %v3527_v42 = vsel %vm345_vm0, %v3519_v2, %v3383_v22 }
 0x21e   : > { %v3289_v23 = vpop.permute.xlu1 %3288  ;;  %v3415_v8 = vpop.permute.xlu0 %3414 }
 0x21f   : > { %v3536_v55 = vsel %vm3533_vm5, %v3527_v42, %v3415_v8  ;;  %v3502_v30 = vsel %vm3498_vm2, %v2722_v37, %v3289_v23 }
 0x222   : > { %v3321_v29 = vpop.permute.xlu1 %3320  ;;  %v3447_v34 = vpop.permute.xlu0 %3446 }
 0x223   : > { %v3545_v35 = vsel %vm3542_vm6, %v3536_v55, %v3447_v34  ;;  %v3511_v50 = vsel %vm3507_vm3, %v3502_v30, %v3321_v29 }
 0x226   : > { %v3353_v53 = vpop.permute.xlu1 %3352  ;;  %v3479_v52 = vpop.permute.xlu0 %3478 }
 0x227   : > { %v3554_v61 = vsel %vm3551_vm7, %v3545_v35, %v3479_v52  ;;  %v3520_v41 = vsel %vm3516_vm4, %v3511_v50, %v3353_v53 }
 0x228   : > { %v3570_v18 = vadd.f32 %v3562_v60, %v3554_v61 }
 0x22a   : > { %3579 = vst.msk [vmem:[%s5350_s8 + $0x10] sm:$0xff] %vm3576_vm8, %v3570_v18  ;;  %v3385_v28 = vpop.permute.xlu1 %3384 }
 0x22b   : > { %v3528_v47 = vsel %vm345_vm0, %v3520_v41, %v3385_v28 }
 0x22e   : > { %v3417_v21 = vpop.permute.xlu1 %3416  ;;  %v3291_v38 = vpop.permute.xlu0 %3290 }
 0x22f   : > { %v3537_v56 = vsel %vm3533_vm5, %v3528_v47, %v3417_v21  ;;  %v3503_v48 = vsel %vm3498_vm2, %v2858_v11, %v3291_v38  ;;  %v3566_v21 = vld [vmem:[%s5339_s6 + $0x30] sm:$0xff] }
 0x232   : > { %v3449_v7 = vpop.permute.xlu1 %3448 }
 0x233   : > { %v3323_v6 = vpop.permute.xlu0 %3322  ;;  %v3546_v10 = vsel %vm3542_vm6, %v3537_v56, %v3449_v7 }
 0x234   : > { %v3512_v15 = vsel %vm3507_vm3, %v3503_v48, %v3323_v6 }
 0x236   : > { %v3481_v57 = vpop.permute.xlu1 %3480 }
 0x237   : > { %v3355_v27 = vpop.permute.xlu0 %3354  ;;  %v3555_v24 = vsel %vm3551_vm7, %v3546_v10, %v3481_v57  ;;  %v3567_v10 = vld [vmem:[%s5339_s6 + $0x38] sm:$0xff] }
 0x238   : > { %v3571_v0 = vadd.f32 %v3563_v44, %v3555_v24  ;;  %v3521_v4 = vsel %vm3516_vm4, %v3512_v15, %v3355_v27 }
 0x23a   : > { %3580 = vst.msk [vmem:[%s5350_s8 + $0x18] sm:$0xff] %vm3576_vm8, %v3571_v0 }
 0x23b   : > { %v3387_v37 = vpop.permute.xlu0 %3386 }
 0x23c   : > { %v3529_v25 = vsel %vm345_vm0, %v3521_v4, %v3387_v37 }
 0x23e   : > { %v3293_v12 = vpop.permute.xlu1 %3292 }
 0x23f   : > { %v3419_v26 = vpop.permute.xlu0 %3418  ;;  %v3504_v31 = vsel %vm3498_vm2, %v2994_v14, %v3293_v12 }
 0x240   : > { %v3538_v3 = vsel %vm3533_vm5, %v3529_v25, %v3419_v26 }
 0x242   : > { %v3325_v51 = vpop.permute.xlu1 %3324 }
 0x243   : > { %v3451_v39 = vpop.permute.xlu0 %3450  ;;  %v3513_v59 = vsel %vm3507_vm3, %v3504_v31, %v3325_v51 }
 0x244   : > { %v3547_v9 = vsel %vm3542_vm6, %v3538_v3, %v3451_v39 }
 0x246   : > { %v3357_v1 = vpop.permute.xlu1 %3356 }
 0x247   : > { %v3483_v46 = vpop.permute.xlu0 %3482  ;;  %v3522_v23 = vsel %vm3516_vm4, %v3513_v59, %v3357_v1 }
 0x248   : > { %v3556_v54 = vsel %vm3551_vm7, %v3547_v9, %v3483_v46 }
 0x249   : > { %v3572_v20 = vadd.f32 %v3564_v33, %v3556_v54 }
 0x24a   : > { %v3389_v11 = vpop.permute.xlu1 %3388 }
 0x24b   : > { %3581 = vst.msk [vmem:[%s5350_s8 + $0x20] sm:$0xff] %vm3576_vm8, %v3572_v20  ;;  %v3530_v8 = vsel %vm345_vm0, %v3522_v23, %v3389_v11 }
 0x24e   : > { %v3421_v62 = vpop.permute.xlu1 %3420  ;;  %v3295_v49 = vpop.permute.xlu0 %3294 }
 0x24f   : > { %v3539_v63 = vsel %vm3533_vm5, %v3530_v8, %v3421_v62  ;;  %v3505_v55 = vsel %vm3498_vm2, %v3130_v45, %v3295_v49 }
 0x252   : > { %v3453_v16 = vpop.permute.xlu1 %3452  ;;  %v3327_v22 = vpop.permute.xlu0 %3326 }
 0x253   : > { %v3548_v19 = vsel %vm3542_vm6, %v3539_v63, %v3453_v16  ;;  %v3514_v35 = vsel %vm3507_vm3, %v3505_v55, %v3327_v22 }
 0x256   : > { %v3485_v29 = vpop.permute.xlu1 %3484  ;;  %v3359_v5 = vpop.permute.xlu0 %3358 }
 0x257   : > { %v3557_v34 = vsel %vm3551_vm7, %v3548_v19, %v3485_v29  ;;  %v3523_v52 = vsel %vm3516_vm4, %v3514_v35, %v3359_v5 }
 0x258   : > { %v3573_v32 = vadd.f32 %v3565_v13, %v3557_v34 }
 0x25a   : > { %3582 = vst.msk [vmem:[%s5350_s8 + $0x28] sm:$0xff] %vm3576_vm8, %v3573_v32  ;;  %v3391_v14 = vpop.permute.xlu0 %3390 }
 0x25b   : > { %v3531_v61 = vsel %vm345_vm0, %v3523_v52, %v3391_v14 }
 0x25e   : > { %v3297_v2 = vpop.permute.xlu1 %3296  ;;  %v3423_v42 = vpop.permute.xlu0 %3422 }
 0x25f   : > { %v3540_v18 = vsel %vm3533_vm5, %v3531_v61, %v3423_v42  ;;  %v3506_v7 = vsel %vm3498_vm2, %v3266_v36, %v3297_v2 }
 0x262   : > { %v3329_v60 = vpop.permute.xlu1 %3328  ;;  %v3455_v53 = vpop.permute.xlu0 %3454 }
 0x263   : > { %v3549_v38 = vsel %vm3542_vm6, %v3540_v18, %v3455_v53  ;;  %v3515_v6 = vsel %vm3507_vm3, %v3506_v7, %v3329_v60 }
 0x266   : > { %v3361_v28 = vpop.permute.xlu1 %3360  ;;  %v3487_v58 = vpop.permute.xlu0 %3486 }
 0x267   : > { %v3558_v43 = vsel %vm3551_vm7, %v3549_v38, %v3487_v58  ;;  %v3524_v47 = vsel %vm3516_vm4, %v3515_v6, %v3361_v28 }
 0x268   : > { %v3574_v45 = vadd.f32 %v3566_v21, %v3558_v43 }
 0x26a   : > { %v3393_v30 = vpop.permute.xlu1 %3392  ;;  %3583 = vst.msk [vmem:[%s5350_s8 + $0x30] sm:$0xff] %vm3576_vm8, %v3574_v45 }
 0x26b   : > { %v3532_v56 = vsel %vm345_vm0, %v3524_v47, %v3393_v30 }
 0x26e   : > { %v3425_v50 = vpop.permute.xlu1 %3424 }
 0x26f   : > { %v3541_v44 = vsel %vm3533_vm5, %v3532_v56, %v3425_v50 }
 0x272   : > { %v3457_v41 = vpop.permute.xlu1 %3456 }
 0x273   : > { %v3550_v57 = vsel %vm3542_vm6, %v3541_v44, %v3457_v41 }
 0x276   : > { %v3489_v17 = vpop.permute.xlu1 %3488 }
 0x277   : > { %v3559_v40 = vsel %vm3551_vm7, %v3550_v57, %v3489_v17 }
 0x278   : > { %v3575_v36 = vadd.f32 %v3567_v10, %v3559_v40 }
 0x27a   : > { %3584 = vst.msk [vmem:[%s5350_s8 + $0x38] sm:$0xff] %vm3576_vm8, %v3575_v36 }
 0x27b   : > { %3914 = shalt.err (!%p3911_p5)
}
 0x27c   : > { %s3915_s29 = scalar_lea.hbm %s5448_s14, 1024  ;;  %s3919_s6 = scalar_lea.hbm %s5507_s4, 2048 }
 0x27d   : > { %p3916_p6 = scmp.ne.s32.totalorder %s5448_s14, %s3915_s29  ;;  %p3920_p10 = scmp.lt.u32.totalorder %s5448_s14, %s5507_s4 }
 0x27e   : > { %p3921_p11 = scmp.lt.u32.totalorder %s3919_s6, %s3915_s29  ;;  %p3923_p13 = scmp.lt.u32.totalorder %s3915_s29, %s5448_s14 }
 0x27f   : > { %p3917_p7 = pnand %p3916_p6, %p4060_p4 }
 0x280   : > { %p3922_p12 = por %p3921_p11, %p3920_p10 }
 0x281   : > { %p3918_p9 = pneg %p3917_p7 }
 0x282   : > { %p3924_p0 = por %p3923_p13, %p3922_p12 }
 0x284   : > { %p3925_p1 = pnand %p3924_p0, %p3918_p9 }
 0x286   : > { %3928 = shalt.err (!%p3925_p1)
}
 0x287   : > { %s3994_s9 = smov 128  }
 0x288   : > { %3825 = dma.vmem_to_hbm [thread:$0]  (%p4060_p4), %s5450_s10, 1024, %s5448_s14, %s5456_s18, %s3994_s9, %s3994_s9, %s3986_s12  }
 0x289 PF: > { %p3831_p2 = scmp.ge.s32.totalorder %s3979_s20, 2  ;;  %s3616_s11 = sand.u32 1, %s3959_s15  }
 0x28a   : > { %s3617_s13 = scalar_lea.sflag [#allocation3], %s3616_s11 }
 0x28b   : > { %p3828_p3 = pnand %p3831_p2, %p4067_p8 }
 0x28d   : > { %3954 = dma.done.wait (!%p3828_p3), %s3617_s13, 1024  }
 0x28e   : > { %3956 = vsyncadd (!%p3828_p3), %s3617_s13, 4294966272  ;;  %s17_s20 = sadd.s32 1, %s3979_s20   ;;  %s5525_s15 = smov %s3963_s16 }
 0x28f   : > { %p14_p5 = scmp.ge.s32.totalorder %s17_s20, 4   ;;  %s5526_s16 = smov %s3967_s17 }
 0x290   : > { %s5527_s17 = smov %s4073_s28  ;;  %s5528_s18 = smov %s3975_s19 }
 0x291   : > { %s5529_s19 = smov %s5531_s23  ;;  %16 = sbr.rel (!%p14_p5) target bundleno = 4 (0x4), region = 80 }
 0x298   :  { %3622 = vsyncpa [#allocation3], 1 }
 0x299   :  { %3624 = vsyncpa [#allocation3 + $0x1], 1 }

</bundles_post_ra>
